<compile_context>
chip_gen: v7x
topology: tpu7x:2x2x1
jax: 0.10.0
libtpu: 0.0.40
codegen_flags: <defaults>
</compile_context>

<pallas_src>
import math

import jax
import jax.numpy as jnp
from jax import lax
from jax.experimental import pallas as pl
from jax.experimental.pallas import tpu as pltpu

# ----- small config (consistent with GPT2Config semantics) -----
B = 2            # batch
S = 16           # sequence length
H = 64           # hidden_size
NUM_HEADS = 4
HEAD_DIM = H // NUM_HEADS
INNER = 4 * H    # n_inner defaults to 4*hidden_size
EPS = 1e-5       # layer_norm_epsilon
NEG_BIAS = -1e9  # masked-score value (exp underflows to 0 after max-subtraction)


def _layernorm(x, g, b):
    mu = jnp.mean(x, axis=-1, keepdims=True)
    var = jnp.mean((x - mu) ** 2, axis=-1, keepdims=True)
    return (x - mu) * lax.rsqrt(var + EPS) * g + b


def _gelu_new(x):
    return 0.5 * x * (1.0 + jnp.tanh(
        math.sqrt(2.0 / math.pi) * (x + 0.044715 * x * x * x)))


def gpt2_block_kernel(x_ref,
                      ln1g_ref, ln1b_ref,
                      wq_ref, bq_ref, wk_ref, bk_ref, wv_ref, bv_ref,
                      wproj_ref, bproj_ref,
                      ln2g_ref, ln2b_ref,
                      wfc_ref, bfc_ref,
                      wmlp_ref, bmlp_ref,
                      out_ref):
    f32 = jnp.float32
    bf16 = jnp.bfloat16
    BH = B * NUM_HEADS

    x = x_ref[...]                                    # (B*S, H) f32

    # ---- ln_1 (f32) ----
    h1 = _layernorm(x, ln1g_ref[...], ln1b_ref[...])
    h1b = h1.astype(bf16)

    # ---- c_attn as three lane-aligned (H,H) matmuls (scale folded into Q) ----
    q = jnp.dot(h1b, wq_ref[...], preferred_element_type=f32) + bq_ref[...]
    k = jnp.dot(h1b, wk_ref[...], preferred_element_type=f32) + bk_ref[...]
    v = jnp.dot(h1b, wv_ref[...], preferred_element_type=f32) + bv_ref[...]

    def split_heads(t):                               # (B*S, H) -> (B*NH, S, HD)
        t = t.reshape(B, S, NUM_HEADS, HEAD_DIM)
        t = jnp.transpose(t, (0, 2, 1, 3))
        return t.reshape(BH, S, HEAD_DIM)

    qh = split_heads(q).astype(bf16)
    kh = split_heads(k).astype(bf16)
    vh = split_heads(v).astype(bf16)

    # ---- causal self-attention, batched over B*NUM_HEADS in one pass ----
    scores = jnp.einsum("bqd,bkd->bqk", qh, kh,
                        preferred_element_type=f32)   # (BH, S, S) f32
    row = lax.broadcasted_iota(jnp.int32, (BH, S, S), 1)
    col = lax.broadcasted_iota(jnp.int32, (BH, S, S), 2)
    scores = jnp.where(row >= col, scores, NEG_BIAS)  # in-kernel causal mask

    m = jnp.max(scores, axis=-1, keepdims=True)
    p = jnp.exp(scores - m)                           # unnormalized probs
    denom = jnp.sum(p, axis=-1, keepdims=True)        # (BH, S, 1), >= 1
    pv = jnp.einsum("bqk,bkd->bqd", p.astype(bf16), vh,
                    preferred_element_type=f32)       # (BH, S, HD)
    # Normalize the small P@V output with an EUP approx reciprocal.
    pv = pv * pl.reciprocal(denom, approx=True)

    # merge heads: (BH, S, HD) -> (B*S, H)
    attn = pv.reshape(B, NUM_HEADS, S, HEAD_DIM)
    attn = jnp.transpose(attn, (0, 2, 1, 3)).reshape(B * S, H)

    # ---- attention c_proj + residual ----
    attn = jnp.dot(attn.astype(bf16), wproj_ref[...],
                   preferred_element_type=f32) + bproj_ref[...]
    hidden = attn + x

    # ---- ln_2 + MLP (c_fc -> gelu_new -> c_proj) + residual ----
    h2 = _layernorm(hidden, ln2g_ref[...], ln2b_ref[...])
    ff = jnp.dot(h2.astype(bf16), wfc_ref[...],
                 preferred_element_type=f32) + bfc_ref[...]   # (B*S, 4H)
    ff = _gelu_new(ff)
    ff = jnp.dot(ff.astype(bf16), wmlp_ref[...],
                 preferred_element_type=f32) + bmlp_ref[...]
    out_ref[...] = hidden + ff


def prepare_params(params):
    """One-time host-side prep: split c_attn, fold attn scale, cast to bf16."""
    (ln1g, ln1b, wqkv, bqkv, wproj, bproj,
     ln2g, ln2b, wfc, bfc, wmlp, bmlp) = params
    scale = 1.0 / math.sqrt(HEAD_DIM)
    bf = lambda w: w.astype(jnp.bfloat16)
    wq = bf(wqkv[:, 0 * H:1 * H] * scale)
    wk = bf(wqkv[:, 1 * H:2 * H])
    wv = bf(wqkv[:, 2 * H:3 * H])
    bq = bqkv[:, 0 * H:1 * H] * scale
    bk = bqkv[:, 1 * H:2 * H]
    bv = bqkv[:, 2 * H:3 * H]
    return (ln1g, ln1b,
            wq, bq, wk, bk, wv, bv,
            bf(wproj), bproj,
            ln2g, ln2b,
            bf(wfc), bfc,
            bf(wmlp), bmlp)


@jax.jit
def gpt2_block(x, prepared):
    x2 = x.reshape(B * S, H)   # fold batch into GEMM rows (single kernel pass)
    vmem = pl.BlockSpec(memory_space=pltpu.MemorySpace.VMEM)
    out = pl.pallas_call(
        gpt2_block_kernel,
        out_shape=jax.ShapeDtypeStruct((B * S, H), jnp.float32),
        in_specs=[vmem] * (1 + len(prepared)),
        out_specs=vmem,
    )(x2, *prepared)
    return out.reshape(B, S, H)


# ---------- pure-JAX reference (mirrors the PyTorch forward, full f32) ----------
def gpt2_block_ref(x, params):
    (ln1g, ln1b, wqkv, bqkv, wproj, bproj,
     ln2g, ln2b, wfc, bfc, wmlpproj, bmlpproj) = params
    residual = x
    h = _layernorm(x, ln1g[0], ln1b[0])
    qkv = h @ wqkv + bqkv[0]
    q, k, v = jnp.split(qkv, 3, axis=-1)

    def split_heads(t):  # (B,S,H) -> (B,nh,S,hd)
        return t.reshape(B, S, NUM_HEADS, HEAD_DIM).transpose(0, 2, 1, 3)

    q, k, v = split_heads(q), split_heads(k), split_heads(v)
    scores = jnp.einsum("bhqd,bhkd->bhqk", q, k) / math.sqrt(HEAD_DIM)
    causal = jnp.tril(jnp.ones((S, S), dtype=bool))
    scores = jnp.where(causal, scores, jnp.finfo(jnp.float32).min)
    p = jax.nn.softmax(scores, axis=-1)
    attn = jnp.einsum("bhqk,bhkd->bhqd", p, v)
    attn = attn.transpose(0, 2, 1, 3).reshape(B, S, H)
    attn = attn @ wproj + bproj[0]
    hidden = attn + residual

    residual = hidden
    h2 = _layernorm(hidden, ln2g[0], ln2b[0])
    ff = _gelu_new(h2 @ wfc + bfc[0])
    ff = ff @ wmlpproj + bmlpproj[0]
    return residual + ff


def init_params(key):
    ks = jax.random.split(key, 6)
    std = 0.02
    ln1g = jnp.ones((1, H), jnp.float32)
    ln1b = jnp.zeros((1, H), jnp.float32)
    ln2g = jnp.ones((1, H), jnp.float32)
    ln2b = jnp.zeros((1, H), jnp.float32)
    wqkv = std * jax.random.normal(ks[0], (H, 3 * H), jnp.float32)
    bqkv = jnp.zeros((1, 3 * H), jnp.float32)
    wproj = std * jax.random.normal(ks[1], (H, H), jnp.float32)
    bproj = jnp.zeros((1, H), jnp.float32)
    wfc = std * jax.random.normal(ks[2], (H, INNER), jnp.float32)
    bfc = jnp.zeros((1, INNER), jnp.float32)
    wmlpproj = std * jax.random.normal(ks[3], (INNER, H), jnp.float32)
    bmlpproj = jnp.zeros((1, H), jnp.float32)
    return (ln1g, ln1b, wqkv, bqkv, wproj, bproj,
            ln2g, ln2b, wfc, bfc, wmlpproj, bmlpproj)


if __name__ == "__main__":
    key = jax.random.PRNGKey(0)
    kx, kp = jax.random.split(key)
    x = jax.random.normal(kx, (B, S, H), jnp.float32)
    params = init_params(kp)
    prepared = prepare_params(params)   # one-time prep, outside the jit path

    out = jax.block_until_ready(gpt2_block(x, prepared))
    ref = gpt2_block_ref(x, params)
    assert out.shape == (B, S, H)
    # bf16 matmul inputs (f32 accumulation) + approx reciprocal -> relaxed tol.
    max_err = jnp.max(jnp.abs(out - ref))
    assert jnp.allclose(out, ref, atol=1e-2, rtol=1e-2), f"max err {max_err}"
    print("KERNEL_OK")
</pallas_src>

<mosaic_0001>
module attributes {stable_mosaic.version = 11 : i64} {
  func.func @gpt2_block_kernel(%arg0: memref<32x64xf32, #tpu.memory_space<vmem>>, %arg1: memref<1x64xf32, #tpu.memory_space<vmem>>, %arg2: memref<1x64xf32, #tpu.memory_space<vmem>>, %arg3: memref<64x64xbf16, #tpu.memory_space<vmem>>, %arg4: memref<1x64xf32, #tpu.memory_space<vmem>>, %arg5: memref<64x64xbf16, #tpu.memory_space<vmem>>, %arg6: memref<1x64xf32, #tpu.memory_space<vmem>>, %arg7: memref<64x64xbf16, #tpu.memory_space<vmem>>, %arg8: memref<1x64xf32, #tpu.memory_space<vmem>>, %arg9: memref<64x64xbf16, #tpu.memory_space<vmem>>, %arg10: memref<1x64xf32, #tpu.memory_space<vmem>>, %arg11: memref<1x64xf32, #tpu.memory_space<vmem>>, %arg12: memref<1x64xf32, #tpu.memory_space<vmem>>, %arg13: memref<64x256xbf16, #tpu.memory_space<vmem>>, %arg14: memref<1x256xf32, #tpu.memory_space<vmem>>, %arg15: memref<256x64xbf16, #tpu.memory_space<vmem>>, %arg16: memref<1x64xf32, #tpu.memory_space<vmem>>, %arg17: memref<32x64xf32, #tpu.memory_space<vmem>>) attributes {dimension_semantics = [], scalar_prefetch = 0 : i64, scratch_operands = 0 : i64, tpu.core_type = #tpu.core_type<tc>} {
    %c0 = arith.constant 0 : index
    %c0_0 = arith.constant 0 : index
    %0 = vector.load %arg0[%c0, %c0_0] : memref<32x64xf32, #tpu.memory_space<vmem>>, vector<32x64xf32>
    %c0_1 = arith.constant 0 : index
    %c0_2 = arith.constant 0 : index
    %1 = vector.load %arg1[%c0_1, %c0_2] : memref<1x64xf32, #tpu.memory_space<vmem>>, vector<1x64xf32>
    %c0_3 = arith.constant 0 : index
    %c0_4 = arith.constant 0 : index
    %2 = vector.load %arg2[%c0_3, %c0_4] : memref<1x64xf32, #tpu.memory_space<vmem>>, vector<1x64xf32>
    %cst = arith.constant dense<0.000000e+00> : vector<32xf32>
    %3 = vector.multi_reduction <add>, %0, %cst [1] : vector<32x64xf32> to vector<32xf32>
    %4 = vector.shape_cast %3 : vector<32xf32> to vector<32x1xf32>
    %cst_5 = arith.constant 6.400000e+01 : f32
    %5 = vector.broadcast %cst_5 : f32 to vector<32x1xf32>
    %6 = arith.divf %4, %5 : vector<32x1xf32>
    %7 = vector.broadcast %6 : vector<32x1xf32> to vector<32x64xf32>
    %8 = arith.subf %0, %7 : vector<32x64xf32>
    %9 = arith.mulf %8, %8 : vector<32x64xf32>
    %cst_6 = arith.constant dense<0.000000e+00> : vector<32xf32>
    %10 = vector.multi_reduction <add>, %9, %cst_6 [1] : vector<32x64xf32> to vector<32xf32>
    %11 = vector.shape_cast %10 : vector<32xf32> to vector<32x1xf32>
    %cst_7 = arith.constant 6.400000e+01 : f32
    %12 = vector.broadcast %cst_7 : f32 to vector<32x1xf32>
    %13 = arith.divf %11, %12 : vector<32x1xf32>
    %14 = vector.broadcast %6 : vector<32x1xf32> to vector<32x64xf32>
    %15 = arith.subf %0, %14 : vector<32x64xf32>
    %cst_8 = arith.constant 9.99999974E-6 : f32
    %16 = vector.broadcast %cst_8 : f32 to vector<32x1xf32>
    %17 = arith.addf %13, %16 : vector<32x1xf32>
    %18 = math.rsqrt %17 : vector<32x1xf32>
    %19 = vector.broadcast %18 : vector<32x1xf32> to vector<32x64xf32>
    %20 = arith.mulf %15, %19 : vector<32x64xf32>
    %21 = vector.broadcast %1 : vector<1x64xf32> to vector<32x64xf32>
    %22 = arith.mulf %20, %21 : vector<32x64xf32>
    %23 = vector.broadcast %2 : vector<1x64xf32> to vector<32x64xf32>
    %24 = arith.addf %22, %23 : vector<32x64xf32>
    %25 = arith.truncf %24 : vector<32x64xf32> to vector<32x64xbf16>
    %c0_9 = arith.constant 0 : index
    %c0_10 = arith.constant 0 : index
    %26 = vector.load %arg3[%c0_9, %c0_10] : memref<64x64xbf16, #tpu.memory_space<vmem>>, vector<64x64xbf16>
    %cst_11 = arith.constant dense<0.000000e+00> : vector<32x64xf32>
    %27 = tpu.matmul %25, %26, %cst_11 {dimension_numbers = #tpu.dot_dimension_numbers<[1], [0], [0], [1], [0, 0, 1, 1], [], []>} : vector<32x64xbf16>, vector<64x64xbf16>, vector<32x64xf32> -> vector<32x64xf32>
    %c0_12 = arith.constant 0 : index
    %c0_13 = arith.constant 0 : index
    %28 = vector.load %arg4[%c0_12, %c0_13] : memref<1x64xf32, #tpu.memory_space<vmem>>, vector<1x64xf32>
    %29 = vector.broadcast %28 : vector<1x64xf32> to vector<32x64xf32>
    %30 = arith.addf %27, %29 : vector<32x64xf32>
    %c0_14 = arith.constant 0 : index
    %c0_15 = arith.constant 0 : index
    %31 = vector.load %arg5[%c0_14, %c0_15] : memref<64x64xbf16, #tpu.memory_space<vmem>>, vector<64x64xbf16>
    %cst_16 = arith.constant dense<0.000000e+00> : vector<32x64xf32>
    %32 = tpu.matmul %25, %31, %cst_16 {dimension_numbers = #tpu.dot_dimension_numbers<[1], [0], [0], [1], [0, 0, 1, 1], [], []>} : vector<32x64xbf16>, vector<64x64xbf16>, vector<32x64xf32> -> vector<32x64xf32>
    %c0_17 = arith.constant 0 : index
    %c0_18 = arith.constant 0 : index
    %33 = vector.load %arg6[%c0_17, %c0_18] : memref<1x64xf32, #tpu.memory_space<vmem>>, vector<1x64xf32>
    %34 = vector.broadcast %33 : vector<1x64xf32> to vector<32x64xf32>
    %35 = arith.addf %32, %34 : vector<32x64xf32>
    %c0_19 = arith.constant 0 : index
    %c0_20 = arith.constant 0 : index
    %36 = vector.load %arg7[%c0_19, %c0_20] : memref<64x64xbf16, #tpu.memory_space<vmem>>, vector<64x64xbf16>
    %cst_21 = arith.constant dense<0.000000e+00> : vector<32x64xf32>
    %37 = tpu.matmul %25, %36, %cst_21 {dimension_numbers = #tpu.dot_dimension_numbers<[1], [0], [0], [1], [0, 0, 1, 1], [], []>} : vector<32x64xbf16>, vector<64x64xbf16>, vector<32x64xf32> -> vector<32x64xf32>
    %c0_22 = arith.constant 0 : index
    %c0_23 = arith.constant 0 : index
    %38 = vector.load %arg8[%c0_22, %c0_23] : memref<1x64xf32, #tpu.memory_space<vmem>>, vector<1x64xf32>
    %39 = vector.broadcast %38 : vector<1x64xf32> to vector<32x64xf32>
    %40 = arith.addf %37, %39 : vector<32x64xf32>
    %41 = vector.shape_cast %30 : vector<32x64xf32> to vector<2x16x4x16xf32>
    %42 = tpu.transpose %41, [0, 2, 1, 3] : vector<2x16x4x16xf32> -> vector<2x4x16x16xf32>
    %43 = vector.shape_cast %42 : vector<2x4x16x16xf32> to vector<8x16x16xf32>
    %44 = arith.truncf %43 : vector<8x16x16xf32> to vector<8x16x16xbf16>
    %45 = vector.shape_cast %35 : vector<32x64xf32> to vector<2x16x4x16xf32>
    %46 = tpu.transpose %45, [0, 2, 1, 3] : vector<2x16x4x16xf32> -> vector<2x4x16x16xf32>
    %47 = vector.shape_cast %46 : vector<2x4x16x16xf32> to vector<8x16x16xf32>
    %48 = arith.truncf %47 : vector<8x16x16xf32> to vector<8x16x16xbf16>
    %49 = vector.shape_cast %40 : vector<32x64xf32> to vector<2x16x4x16xf32>
    %50 = tpu.transpose %49, [0, 2, 1, 3] : vector<2x16x4x16xf32> -> vector<2x4x16x16xf32>
    %51 = vector.shape_cast %50 : vector<2x4x16x16xf32> to vector<8x16x16xf32>
    %52 = arith.truncf %51 : vector<8x16x16xf32> to vector<8x16x16xbf16>
    "tpu.trace_start"() <{level = 10 : i32, message = "bqd,bkd->bqk"}> : () -> ()
    %cst_24 = arith.constant dense<0.000000e+00> : vector<8x16x16xf32>
    %53 = tpu.matmul %44, %48, %cst_24 {dimension_numbers = #tpu.dot_dimension_numbers<[2], [2], [1], [1], [0, 0, 0, 1, 1, 1], [0], [0]>} : vector<8x16x16xbf16>, vector<8x16x16xbf16>, vector<8x16x16xf32> -> vector<8x16x16xf32>
    "tpu.trace_stop"() : () -> ()
    %54 = tpu.iota {dimensions = array<i32: 1>} : vector<8x16x16xi32>
    %55 = tpu.iota {dimensions = array<i32: 2>} : vector<8x16x16xi32>
    %56 = arith.cmpi sge, %54, %55 : vector<8x16x16xi32>
    %cst_25 = arith.constant -1.000000e+09 : f32
    %57 = vector.broadcast %cst_25 : f32 to vector<8x16x16xf32>
    %58 = arith.select %56, %53, %57 : vector<8x16x16xi1>, vector<8x16x16xf32>
    %cst_26 = arith.constant dense<0xFF800000> : vector<8x16xf32>
    %59 = vector.multi_reduction <maximumf>, %58, %cst_26 [2] : vector<8x16x16xf32> to vector<8x16xf32>
    %60 = vector.shape_cast %59 : vector<8x16xf32> to vector<8x16x1xf32>
    %61 = vector.broadcast %60 : vector<8x16x1xf32> to vector<8x16x16xf32>
    %62 = arith.subf %58, %61 : vector<8x16x16xf32>
    %63 = math.exp %62 : vector<8x16x16xf32>
    %cst_27 = arith.constant dense<0.000000e+00> : vector<8x16xf32>
    %64 = vector.multi_reduction <add>, %63, %cst_27 [2] : vector<8x16x16xf32> to vector<8x16xf32>
    %65 = vector.shape_cast %64 : vector<8x16xf32> to vector<8x16x1xf32>
    %66 = arith.truncf %63 : vector<8x16x16xf32> to vector<8x16x16xbf16>
    "tpu.trace_start"() <{level = 10 : i32, message = "bqk,bkd->bqd"}> : () -> ()
    %cst_28 = arith.constant dense<0.000000e+00> : vector<8x16x16xf32>
    %67 = tpu.matmul %66, %52, %cst_28 {dimension_numbers = #tpu.dot_dimension_numbers<[2], [1], [1], [2], [0, 0, 0, 1, 1, 2], [0], [0]>} : vector<8x16x16xbf16>, vector<8x16x16xbf16>, vector<8x16x16xf32> -> vector<8x16x16xf32>
    "tpu.trace_stop"() : () -> ()
    %68 = tpu.reciprocal %65 {approx = true} : vector<8x16x1xf32> -> vector<8x16x1xf32>
    %69 = vector.broadcast %68 : vector<8x16x1xf32> to vector<8x16x16xf32>
    %70 = arith.mulf %67, %69 : vector<8x16x16xf32>
    %71 = vector.shape_cast %70 : vector<8x16x16xf32> to vector<2x4x16x16xf32>
    %72 = tpu.transpose %71, [0, 2, 1, 3] : vector<2x4x16x16xf32> -> vector<2x16x4x16xf32>
    %73 = vector.shape_cast %72 : vector<2x16x4x16xf32> to vector<32x64xf32>
    %74 = arith.truncf %73 : vector<32x64xf32> to vector<32x64xbf16>
    %c0_29 = arith.constant 0 : index
    %c0_30 = arith.constant 0 : index
    %75 = vector.load %arg9[%c0_29, %c0_30] : memref<64x64xbf16, #tpu.memory_space<vmem>>, vector<64x64xbf16>
    %cst_31 = arith.constant dense<0.000000e+00> : vector<32x64xf32>
    %76 = tpu.matmul %74, %75, %cst_31 {dimension_numbers = #tpu.dot_dimension_numbers<[1], [0], [0], [1], [0, 0, 1, 1], [], []>} : vector<32x64xbf16>, vector<64x64xbf16>, vector<32x64xf32> -> vector<32x64xf32>
    %c0_32 = arith.constant 0 : index
    %c0_33 = arith.constant 0 : index
    %77 = vector.load %arg10[%c0_32, %c0_33] : memref<1x64xf32, #tpu.memory_space<vmem>>, vector<1x64xf32>
    %78 = vector.broadcast %77 : vector<1x64xf32> to vector<32x64xf32>
    %79 = arith.addf %76, %78 : vector<32x64xf32>
    %80 = arith.addf %79, %0 : vector<32x64xf32>
    %c0_34 = arith.constant 0 : index
    %c0_35 = arith.constant 0 : index
    %81 = vector.load %arg11[%c0_34, %c0_35] : memref<1x64xf32, #tpu.memory_space<vmem>>, vector<1x64xf32>
    %c0_36 = arith.constant 0 : index
    %c0_37 = arith.constant 0 : index
    %82 = vector.load %arg12[%c0_36, %c0_37] : memref<1x64xf32, #tpu.memory_space<vmem>>, vector<1x64xf32>
    %cst_38 = arith.constant dense<0.000000e+00> : vector<32xf32>
    %83 = vector.multi_reduction <add>, %80, %cst_38 [1] : vector<32x64xf32> to vector<32xf32>
    %84 = vector.shape_cast %83 : vector<32xf32> to vector<32x1xf32>
    %cst_39 = arith.constant 6.400000e+01 : f32
    %85 = vector.broadcast %cst_39 : f32 to vector<32x1xf32>
    %86 = arith.divf %84, %85 : vector<32x1xf32>
    %87 = vector.broadcast %86 : vector<32x1xf32> to vector<32x64xf32>
    %88 = arith.subf %80, %87 : vector<32x64xf32>
    %89 = arith.mulf %88, %88 : vector<32x64xf32>
    %cst_40 = arith.constant dense<0.000000e+00> : vector<32xf32>
    %90 = vector.multi_reduction <add>, %89, %cst_40 [1] : vector<32x64xf32> to vector<32xf32>
    %91 = vector.shape_cast %90 : vector<32xf32> to vector<32x1xf32>
    %cst_41 = arith.constant 6.400000e+01 : f32
    %92 = vector.broadcast %cst_41 : f32 to vector<32x1xf32>
    %93 = arith.divf %91, %92 : vector<32x1xf32>
    %94 = vector.broadcast %86 : vector<32x1xf32> to vector<32x64xf32>
    %95 = arith.subf %80, %94 : vector<32x64xf32>
    %cst_42 = arith.constant 9.99999974E-6 : f32
    %96 = vector.broadcast %cst_42 : f32 to vector<32x1xf32>
    %97 = arith.addf %93, %96 : vector<32x1xf32>
    %98 = math.rsqrt %97 : vector<32x1xf32>
    %99 = vector.broadcast %98 : vector<32x1xf32> to vector<32x64xf32>
    %100 = arith.mulf %95, %99 : vector<32x64xf32>
    %101 = vector.broadcast %81 : vector<1x64xf32> to vector<32x64xf32>
    %102 = arith.mulf %100, %101 : vector<32x64xf32>
    %103 = vector.broadcast %82 : vector<1x64xf32> to vector<32x64xf32>
    %104 = arith.addf %102, %103 : vector<32x64xf32>
    %105 = arith.truncf %104 : vector<32x64xf32> to vector<32x64xbf16>
    %c0_43 = arith.constant 0 : index
    %c0_44 = arith.constant 0 : index
    %106 = vector.load %arg13[%c0_43, %c0_44] : memref<64x256xbf16, #tpu.memory_space<vmem>>, vector<64x256xbf16>
    %cst_45 = arith.constant dense<0.000000e+00> : vector<32x256xf32>
    %107 = tpu.matmul %105, %106, %cst_45 {dimension_numbers = #tpu.dot_dimension_numbers<[1], [0], [0], [1], [0, 0, 1, 1], [], []>} : vector<32x64xbf16>, vector<64x256xbf16>, vector<32x256xf32> -> vector<32x256xf32>
    %c0_46 = arith.constant 0 : index
    %c0_47 = arith.constant 0 : index
    %108 = vector.load %arg14[%c0_46, %c0_47] : memref<1x256xf32, #tpu.memory_space<vmem>>, vector<1x256xf32>
    %109 = vector.broadcast %108 : vector<1x256xf32> to vector<32x256xf32>
    %110 = arith.addf %107, %109 : vector<32x256xf32>
    %cst_48 = arith.constant 5.000000e-01 : f32
    %111 = vector.broadcast %cst_48 : f32 to vector<32x256xf32>
    %112 = arith.mulf %111, %110 : vector<32x256xf32>
    %cst_49 = arith.constant 4.471500e-02 : f32
    %113 = vector.broadcast %cst_49 : f32 to vector<32x256xf32>
    %114 = arith.mulf %113, %110 : vector<32x256xf32>
    %115 = arith.mulf %114, %110 : vector<32x256xf32>
    %116 = arith.mulf %115, %110 : vector<32x256xf32>
    %117 = arith.addf %110, %116 : vector<32x256xf32>
    %cst_50 = arith.constant 0.797884583 : f32
    %118 = vector.broadcast %cst_50 : f32 to vector<32x256xf32>
    %119 = arith.mulf %118, %117 : vector<32x256xf32>
    %120 = math.tanh %119 : vector<32x256xf32>
    %cst_51 = arith.constant 1.000000e+00 : f32
    %121 = vector.broadcast %cst_51 : f32 to vector<32x256xf32>
    %122 = arith.addf %121, %120 : vector<32x256xf32>
    %123 = arith.mulf %112, %122 : vector<32x256xf32>
    %124 = arith.truncf %123 : vector<32x256xf32> to vector<32x256xbf16>
    %c0_52 = arith.constant 0 : index
    %c0_53 = arith.constant 0 : index
    %125 = vector.load %arg15[%c0_52, %c0_53] : memref<256x64xbf16, #tpu.memory_space<vmem>>, vector<256x64xbf16>
    %cst_54 = arith.constant dense<0.000000e+00> : vector<32x64xf32>
    %126 = tpu.matmul %124, %125, %cst_54 {dimension_numbers = #tpu.dot_dimension_numbers<[1], [0], [0], [1], [0, 0, 1, 1], [], []>} : vector<32x256xbf16>, vector<256x64xbf16>, vector<32x64xf32> -> vector<32x64xf32>
    %c0_55 = arith.constant 0 : index
    %c0_56 = arith.constant 0 : index
    %127 = vector.load %arg16[%c0_55, %c0_56] : memref<1x64xf32, #tpu.memory_space<vmem>>, vector<1x64xf32>
    %128 = vector.broadcast %127 : vector<1x64xf32> to vector<32x64xf32>
    %129 = arith.addf %126, %128 : vector<32x64xf32>
    %130 = arith.addf %80, %129 : vector<32x64xf32>
    %c0_57 = arith.constant 0 : index
    %c0_58 = arith.constant 0 : index
    %131 = vector.load %arg17[%c0_57, %c0_58] : memref<32x64xf32, #tpu.memory_space<vmem>>, vector<32x64xf32>
    tpu.vector_store %arg17[%c0_57, %c0_58], %130 {strides = array<i32>} : memref<32x64xf32, #tpu.memory_space<vmem>>, vector<32x64xf32>,
    return
  }
}

</mosaic_0001>

<bundles_post_ra>
// kernel: gpt2_block.1
= control target key start
LH: loop header
LB: loop body
LE: loop exit
PB: predicated region body
PF: predicated region fallthrough
CT: control target
= control target key end

     0   :  { %s6436_s0 = inlined_call_operand.vmem [shape: f32[32,64], index: 0, kind: input, shape index: {}]   ;;  %s6437_s1 = inlined_call_operand.hbm [shape: f32[1,64], index: 1, kind: input, shape index: {}]   ;;  %s6438_s2 = inlined_call_operand.hbm [shape: f32[1,64], index: 2, kind: input, shape index: {}]   ;;  %s6439_s3 = inlined_call_operand.vmem [shape: bf16[64,64], index: 3, kind: input, shape index: {}]   ;;  %s6440_s4 = inlined_call_operand.hbm [shape: f32[1,64], index: 4, kind: input, shape index: {}]   ;;  %s6441_s5 = inlined_call_operand.vmem [shape: bf16[64,64], index: 5, kind: input, shape index: {}]   ;;  %s6442_s6 = inlined_call_operand.hbm [shape: f32[1,64], index: 6, kind: input, shape index: {}]   ;;  %s6443_s7 = inlined_call_operand.vmem [shape: bf16[64,64], index: 7, kind: input, shape index: {}]   ;;  %s6444_s8 = inlined_call_operand.hbm [shape: f32[1,64], index: 8, kind: input, shape index: {}]   ;;  %s6445_s9 = inlined_call_operand.vmem [shape: bf16[64,64], index: 9, kind: input, shape index: {}]   ;;  %s6446_s10 = inlined_call_operand.vmem [shape: f32[1,64], index: 10, kind: input, shape index: {}]   ;;  %s6447_s11 = inlined_call_operand.vmem [shape: f32[1,64], index: 11, kind: input, shape index: {}]   ;;  %s6448_s12 = inlined_call_operand.vmem [shape: f32[1,64], index: 12, kind: input, shape index: {}]   ;;  %s6449_s13 = inlined_call_operand.vmem [shape: bf16[64,256], index: 13, kind: input, shape index: {}]   ;;  %s6450_s14 = inlined_call_operand.vmem [shape: f32[1,256], index: 14, kind: input, shape index: {}]   ;;  %s6451_s15 = inlined_call_operand.vmem [shape: bf16[256,64], index: 15, kind: input, shape index: {}]   ;;  %s6452_s16 = inlined_call_operand.vmem [shape: f32[1,64], index: 16, kind: input, shape index: {}]   ;;  %s6453_s17 = inlined_call_operand.hbm [shape: f32[32,64], index: 17, kind: output, shape index: {}]  }
   0x1   :  { %6456 = sst [smem:[#allocation16_spill]] %s6436_s0 }
   0x2   :  { %6457 = sst [smem:[#allocation17_spill]] %s6437_s1 }
   0x3   :  { %22 = vsyncpa [#allocation3], 0 }
   0x4   :  { %23 = vsyncpa [#allocation6], 0 }
   0x5   :  { %24 = vsyncpa [#allocation9], 0 }
   0x6   :  { %25 = vsyncpa [#allocation4], 0  ;;  %s5036_s24 = smov [#allocation5]   ;;  %s5037_s26 = smov [#allocation8]  }
   0x7   :  { %s44_s25 = sshll.u32 %s5036_s24, 4  ;;  %s68_s27 = sshll.u32 %s5037_s26, 4  ;;  %s45_s25 = int_to_ptr.vmem [resolvable:$true] %s44_s25  ;;  %s69_s27 = int_to_ptr.vmem [resolvable:$true] %s68_s27 }
   0x8   :  { %s4896_s0 = scalar_lea.hbm %s6438_s2, 16 }
   0x9   :  { %p4897_p0 = scmp.ne.s32.totalorder %s6438_s2, %s4896_s0  ;;  %p4900_p1 = scmp.lt.u32.totalorder %s4896_s0, %s6438_s2 }
   0xb   :  { %p4902_p2 = pnand %p4900_p1, %p4897_p0 }
   0xd   :  { %4905 = shalt.err (!%p4902_p2)
}
   0xe   :  { %s4906_s20 = scalar_lea.vmem %s45_s25, 16  ;;  %s4910_s21 = scalar_lea.vmem %s45_s25, 32 }
   0xf   :  { %p4907_p3 = scmp.ne.s32.totalorder %s45_s25, %s4906_s20  ;;  %p4911_p4 = scmp.lt.s32.totalorder %s45_s25, %s45_s25 }
  0x10   :  { %p4912_p5 = scmp.lt.s32.totalorder %s4910_s21, %s4906_s20 }
  0x12   :  { %p4913_p6 = por %p4912_p5, %p4911_p4 }
  0x14   :  { %p4914_p7 = pnand %p4913_p6, %p4907_p3 }
  0x16   :  { %4917 = shalt.err (!%p4914_p7)
}
  0x17   :  { %47 = dma.hbm_to_vmem [thread:$0]  %s6438_s2, 16, %s45_s25, [#allocation6]  }
  0x18   :  { %s4918_s28 = scalar_lea.hbm %s6442_s6, 16 }
  0x19   :  { %p4919_p8 = scmp.ne.s32.totalorder %s6442_s6, %s4918_s28  ;;  %p4922_p9 = scmp.lt.u32.totalorder %s4918_s28, %s6442_s6 }
  0x1b   :  { %p4924_p10 = pnand %p4922_p9, %p4919_p8 }
  0x1d   :  { %4927 = shalt.err (!%p4924_p10)
}
  0x1e   :  { %s4928_s19 = scalar_lea.vmem %s69_s27, 16  ;;  %s4932_s1 = scalar_lea.vmem %s69_s27, 32 }
  0x1f   :  { %p4929_p11 = scmp.ne.s32.totalorder %s69_s27, %s4928_s19  ;;  %p4933_p12 = scmp.lt.s32.totalorder %s69_s27, %s69_s27 }
  0x20   :  { %p4934_p13 = scmp.lt.s32.totalorder %s4932_s1, %s4928_s19 }
  0x22   :  { %p4935_p0 = por %p4934_p13, %p4933_p12 }
  0x24   :  { %p4936_p1 = pnand %p4935_p0, %p4929_p11 }
  0x26   :  { %4939 = shalt.err (!%p4936_p1)
}
  0x27   :  { %71 = dma.hbm_to_vmem [thread:$0]  %s6442_s6, 16, %s69_s27, [#allocation9]  }
  0x28   :  { %s5038_s20 = smov [#allocation2]   ;;  %s5039_s22 = smov [#allocation7]  }
  0x29   :  { %s34_s21 = sshll.u32 %s5038_s20, 4  ;;  %s56_s23 = sshll.u32 %s5039_s22, 4  ;;  %s35_s21 = int_to_ptr.vmem [resolvable:$true] %s34_s21  ;;  %s57_s23 = int_to_ptr.vmem [resolvable:$true] %s56_s23 }
  0x2a   :  { %s6458_s28 = sld [smem:[#allocation17_spill]] }
  0x30   :  { %s4940_s29 = scalar_lea.hbm %s6458_s28, 16 }
  0x31   :  { %p4941_p2 = scmp.ne.s32.totalorder %s6458_s28, %s4940_s29  ;;  %p4944_p3 = scmp.lt.u32.totalorder %s4940_s29, %s6458_s28 }
  0x33   :  { %p4946_p4 = pnand %p4944_p3, %p4941_p2 }
  0x35   :  { %4949 = shalt.err (!%p4946_p4)
}
  0x36   :  { %s4950_s6 = scalar_lea.vmem %s35_s21, 16  ;;  %s4954_s27 = scalar_lea.vmem %s35_s21, 32 }
  0x37   :  { %p4951_p5 = scmp.ne.s32.totalorder %s35_s21, %s4950_s6  ;;  %p4955_p6 = scmp.lt.s32.totalorder %s35_s21, %s35_s21 }
  0x38   :  { %p4956_p7 = scmp.lt.s32.totalorder %s4954_s27, %s4950_s6 }
  0x3a   :  { %p4957_p8 = por %p4956_p7, %p4955_p6 }
  0x3c   :  { %p4958_p9 = pnand %p4957_p8, %p4951_p5 }
  0x3e   :  { %4961 = shalt.err (!%p4958_p9)
}
  0x3f   :  { %37 = dma.hbm_to_vmem [thread:$0]  %s6458_s28, 16, %s35_s21, [#allocation3]  }
  0x40   :  { %s4962_s22 = scalar_lea.hbm %s6440_s4, 16 }
  0x41   :  { %p4963_p10 = scmp.ne.s32.totalorder %s6440_s4, %s4962_s22  ;;  %p4966_p11 = scmp.lt.u32.totalorder %s4962_s22, %s6440_s4 }
  0x43   :  { %p4968_p12 = pnand %p4966_p11, %p4963_p10 }
  0x45   :  { %4971 = shalt.err (!%p4968_p12)
}
  0x46   :  { %s4972_s30 = scalar_lea.vmem %s57_s23, 16  ;;  %s4976_s18 = scalar_lea.vmem %s57_s23, 32 }
  0x47   :  { %p4973_p13 = scmp.ne.s32.totalorder %s57_s23, %s4972_s30  ;;  %p4977_p0 = scmp.lt.s32.totalorder %s57_s23, %s57_s23 }
  0x48   :  { %p4978_p1 = scmp.lt.s32.totalorder %s4976_s18, %s4972_s30 }
  0x4a   :  { %p4979_p2 = por %p4978_p1, %p4977_p0 }
  0x4c   :  { %p4980_p3 = pnand %p4979_p2, %p4973_p13 }
  0x4e   :  { %4983 = shalt.err (!%p4980_p3)
}
  0x4f   :  { %59 = dma.hbm_to_vmem [thread:$0]  %s6440_s4, 16, %s57_s23, [#allocation6]  }
  0x50   :  { %s5040_s19 = smov [#allocation10]   ;;  %s4984_s2 = scalar_lea.hbm %s6444_s8, 16 }
  0x51   :  { %s80_s6 = sshll.u32 %s5040_s19, 4  ;;  %p4985_p4 = scmp.ne.s32.totalorder %s6444_s8, %s4984_s2  ;;  %s81_s6 = int_to_ptr.vmem [resolvable:$true] %s80_s6 }
  0x52   :  { %p4988_p5 = scmp.lt.u32.totalorder %s4984_s2, %s6444_s8 }
  0x54   :  { %p4990_p6 = pnand %p4988_p5, %p4985_p4 }
  0x56   :  { %4993 = shalt.err (!%p4990_p6)
}
  0x57   :  { %s4994_s26 = scalar_lea.vmem %s81_s6, 16  ;;  %s4998_s4 = scalar_lea.vmem %s81_s6, 32 }
  0x58   :  { %p4995_p7 = scmp.ne.s32.totalorder %s81_s6, %s4994_s26  ;;  %p4999_p8 = scmp.lt.s32.totalorder %s81_s6, %s81_s6 }
  0x59   :  { %p5000_p9 = scmp.lt.s32.totalorder %s4998_s4, %s4994_s26 }
  0x5b   :  { %p5001_p10 = por %p5000_p9, %p4999_p8 }
  0x5d   :  { %p5002_p11 = pnand %p5001_p10, %p4995_p7 }
  0x5f   :  { %5005 = shalt.err (!%p5002_p11)
}
  0x60   :  { %83 = dma.hbm_to_vmem [thread:$0]  %s6444_s8, 16, %s81_s6, [#allocation9]  }
  0x61   :  { %5028 = dma.done.wait [#allocation3], 16  }
  0x62   :  { %5029 = vsyncadd [#allocation3], 4294967280 }
  0x63   :  { %5030 = dma.done.wait [#allocation6], 32  }
  0x64   :  { %5031 = vsyncadd [#allocation6], 4294967264 }
  0x65   :  { %5032 = dma.done.wait [#allocation9], 32  }
  0x66   :  { %5033 = vsyncadd [#allocation9], 4294967264  ;;  %vm122_vm0 = vcmask 523264   ;;  %s6459_s18 = sld [smem:[#allocation16_spill]]  ;;  %v4752_v28 = vld [vmem:[%s6439_s3] sm:$0xff]   ;;  %v4754_v30 = vld [vmem:[%s6439_s3 + $0x8] sm:$0xff]  }
  0x67   :  { %v4753_v29 = vld [vmem:[%s6443_s7] sm:$0xff]   ;;  %4559 = vmatprep.subr.bf16.mxu1 %v4752_v28  ;;  %v4755_v31 = vld [vmem:[%s6443_s7 + $0x8] sm:$0xff]   ;;  %v4756_v32 = vld [vmem:[%s6439_s3 + $0x10] sm:$0xff]   ;;  %s5041_s22 = smov 112   ;;  %s5043_s24 = smov 80   ;;  %vm5045_vm1 = vmmov 0  }
  0x68   :  { %4560 = vmatpush3.bf16.msra.mxu1 %v4752_v28  ;;  %4583 = vmatprep.subr.bf16.mxu0 %v4753_v29  ;;  %v4757_v33 = vld [vmem:[%s6443_s7 + $0x10] sm:$0xff]   ;;  %v4758_v34 = vld [vmem:[%s6439_s3 + $0x18] sm:$0xff]   ;;  %v4760_v36 = vld [vmem:[%s6441_s5] sm:$0xff]   ;;  %vm2244_vm2 = vcmask 130048   ;;  %s5048_s26 = smov 32   ;;  %s5049_s29 = smov 16  }
  0x69   :  { %4584 = vmatpush3.bf16.msra.mxu0 %v4753_v29  ;;  %4561 = vmatprep.subr.bf16.mxu1 %v4754_v30  ;;  %v4759_v35 = vld [vmem:[%s6443_s7 + $0x18] sm:$0xff]   ;;  %v4368_v51 = vld [vmem:[#allocation2] ss:$0 sm:$0xff]  ;;  %v4369_v57 = vld [vmem:[#allocation5] ss:$0 sm:$0xff]  ;;  %v5044_v29 = vmov 0.0  }
  0x6a   :  { %4585 = vmatprep.subr.bf16.mxu0 %v4755_v31  ;;  %s5050_s0 = smov 48   ;;  %vm3776_vm5 = vcmask 261120   ;;  %vm3781_vm6 = vcmask 392192  }
  0x6c   :  { %v116_v0 = vld [vmem:[%s6459_s18] sm:$0xff]  ;;  %v118_v1 = vld [vmem:[%s6459_s18 + $0x10] sm:$0xff]  ;;  %v117_v2 = vld [vmem:[%s6459_s18 + $0x8] sm:$0xff]  ;;  %4562 = vmatpush3.bf16.msra.mxu1 %v4754_v30 }
  0x6d   :  { %v123_v3 = vsel %vm122_vm0, %v116_v0, 0.0  ;;  %v129_v4 = vsel %vm122_vm0, %v118_v1, 0.0  ;;  %v126_v5 = vsel %vm122_vm0, %v117_v2, 0.0  ;;  %v119_v6 = vld [vmem:[%s6459_s18 + $0x18] sm:$0xff]  ;;  %4586 = vmatpush3.bf16.msra.mxu0 %v4755_v31  ;;  %4563 = vmatprep.subr.bf16.mxu1 %v4756_v32  ;;  %v4384_v31 = vld [vmem:[#allocation10] ss:$0 sm:$0xff] }
  0x6e   :  { %124 = vadd.xlane.f32.xlu0 %v123_v3  ;;  %130 = vadd.xlane.f32.xlu1 %v129_v4  ;;  %v132_v7 = vsel %vm122_vm0, %v119_v6, 0.0 }
  0x6f   :  { %4587 = vmatprep.subr.bf16.mxu0 %v4757_v33 }
  0x70   :  { %4564 = vmatpush3.bf16.msra.mxu1 %v4756_v32 }
  0x71   :  { %4588 = vmatpush3.bf16.msra.mxu0 %v4757_v33  ;;  %4565 = vmatprep.subr.bf16.mxu1 %v4758_v34 }
  0x72   :  { %127 = vadd.xlane.f32.xlu0 %v126_v5  ;;  %133 = vadd.xlane.f32.xlu1 %v132_v7  ;;  %v4761_v5 = vld [vmem:[%s6441_s5 + $0x8] sm:$0xff]   ;;  %v4763_v7 = vld [vmem:[%s6441_s5 + $0x18] sm:$0xff]  }
  0x73   :  { %4589 = vmatprep.subr.bf16.mxu0 %v4759_v35 }
  0x74   :  { %4566 = vmatpush3.bf16.msra.mxu1 %v4758_v34 }
  0x75   :  { %4590 = vmatpush3.bf16.msra.mxu0 %v4759_v35  ;;  %4571 = vmatprep.subr.bf16.mxu1 %v4760_v36 }
  0x76   :  { %4607 = vmatprep.subr.bf16.mxu0 %v5044_v29 }
  0xfb   :  { %v125_v8 = vpop.xlane.xlu0 %124  ;;  %v131_v9 = vpop.xlane.xlu1 %130 }
  0xfc   :  { %v136_v10 = vmul.f32 0.015625, %v125_v8  ;;  %v138_v11 = vmul.f32 0.015625, %v131_v9  ;;  %v4370_v8 = vld [vmem:[#allocation7] ss:$0 sm:$0xff] }
  0xfe   :  { %v5221_v12 = vsub.f32 %v116_v0, %v136_v10  ;;  %v5223_v13 = vsub.f32 %v118_v1, %v138_v11 }
  0xff   :  { %v128_v14 = vpop.xlane.xlu0 %127  ;;  %v134_v15 = vpop.xlane.xlu1 %133 }
 0x100   :  { %v137_v16 = vmul.f32 0.015625, %v128_v14  ;;  %v139_v17 = vmul.f32 0.015625, %v134_v15  ;;  %v144_v18 = vmul.f32 %v5221_v12, %v5221_v12  ;;  %v146_v19 = vmul.f32 %v5223_v13, %v5223_v13 }
 0x102   :  { %v141_v20 = vsub.f32 %v117_v2, %v137_v16  ;;  %v5229_v21 = vsub.f32 %v119_v6, %v139_v17  ;;  %v148_v22 = vsel %vm122_vm0, %v144_v18, 0.0  ;;  %v154_v23 = vsel %vm122_vm0, %v146_v19, 0.0  ;;  %v4762_v6 = vld [vmem:[%s6441_s5 + $0x10] sm:$0xff]   ;;  %v4377_v19 = vld [vmem:[#allocation8] ss:$0 sm:$0xff]  ;;  %s5042_s5 = smov 96  }
 0x103   :  { %149 = vadd.xlane.f32.xlu0 %v148_v22 }
 0x104   :  { %v145_v24 = vmul.f32 %v141_v20, %v141_v20  ;;  %v147_v25 = vmul.f32 %v5229_v21, %v5229_v21 }
 0x106   :  { %v151_v26 = vsel %vm122_vm0, %v145_v24, 0.0  ;;  %v157_v27 = vsel %vm122_vm0, %v147_v25, 0.0 }
 0x107   :  { %155 = vadd.xlane.f32.xlu0 %v154_v23  ;;  %152 = vadd.xlane.f32.xlu1 %v151_v26 }
 0x10b   :  { %158 = vadd.xlane.f32.xlu1 %v157_v27 }
 0x190   :  { %v150_v37 = vpop.xlane.xlu0 %149 }
 0x191   :  { %v160_v38 = vmul.f32 0.015625, %v150_v37 }
 0x193   :  { %v164_v39 = vadd.f32 1e-05, %v160_v38  ;;  %v513_v38 = vlaneseq }
 0x194   :  { %v153_v40 = vpop.xlane.xlu1 %152  ;;  %v156_v41 = vpop.xlane.xlu0 %155 }
 0x195   :  { %4796 = vrsqrt.f32 %v164_v39  ;;  %v161_v42 = vmul.f32 0.015625, %v153_v40  ;;  %v162_v43 = vmul.f32 0.015625, %v156_v41 }
 0x197   :  { %v165_v44 = vadd.f32 1e-05, %v161_v42  ;;  %v166_v45 = vadd.f32 1e-05, %v162_v43  ;;  %v5385_v42 = vshrl.u32 %v513_v38, 7 }
 0x198   :  { %v159_v46 = vpop.xlane.xlu1 %158 }
 0x199   :  { %4798 = vrsqrt.f32 %v165_v44  ;;  %v163_v47 = vmul.f32 0.015625, %v159_v46 }
 0x19a   :  { %4800 = vrsqrt.f32 %v166_v45  ;;  %v5047_v45 = vmov 1934713408  }
 0x19b   :  { %v167_v48 = vadd.f32 1e-05, %v163_v47  ;;  %v543_v46 = vunpack.c.l.s4 %v5047_v45 }
 0x19d   :  { %4802 = vrsqrt.f32 %v167_v48 }
 0x19f   :  { %v4797_v49 = vpop.eup %4796 }
 0x1a0   :  { %v172_v50 = vmul.f32 %v4797_v49, %v5221_v12 }
 0x1a2   :  { %v182_v55 = vmul.f32 %v4368_v51, %v172_v50 }
 0x1a3   :  { %v4799_v52 = vpop.eup %4798 }
 0x1a4   :  { %v4801_v53 = vpop.eup %4800  ;;  %v173_v54 = vmul.f32 %v4799_v52, %v141_v20  ;;  %v192_v61 = vadd.f32 %v4369_v57, %v182_v55 }
 0x1a5   :  { %v174_v56 = vmul.f32 %v4801_v53, %v5223_v13 }
 0x1a6   :  { %v183_v58 = vmul.f32 %v4368_v51, %v173_v54 }
 0x1a7   :  { %v4803_v59 = vpop.eup %4802  ;;  %v184_v63 = vmul.f32 %v4368_v51, %v174_v56 }
 0x1a8   :  { %v175_v60 = vmul.f32 %v4803_v59, %v5229_v21  ;;  %v193_v62 = vadd.f32 %v4369_v57, %v183_v58 }
 0x1a9   :  { %v194_v2 = vadd.f32 %v4369_v57, %v184_v63 }
 0x1aa   :  { %v196_v0 = vpack.c.bf16 %v193_v62, %v192_v61  ;;  %v185_v1 = vmul.f32 %v4368_v51, %v175_v60  ;;  %v544_v51 = vunpack.c.0.s8 %v543_v46 }
 0x1ac   :  { %4567 = vmatprep.mubr.msk.bf16.mxu1 %vm122_vm0, %v196_v0  ;;  %4591 = vmatprep.mubr.msk.bf16.mxu0 %vm122_vm0, %v196_v0  ;;  %v195_v3 = vadd.f32 %v4369_v57, %v185_v1  ;;  %v5397_v59 = vsub.s32 %v544_v51, %v5385_v42 }
 0x1ae   :  { %v197_v4 = vpack.c.bf16 %v195_v3, %v194_v2 }
 0x1b0   :  { %4568 = vmatmul.mubr.msk.bf16.vlgmr.msra.gmra.mrb[0].mxu1 %vm122_vm0, %v197_v4  ;;  %4592 = vmatmul.mubr.msk.bf16.vlgmr.msra.gmra.mrb[0].mxu0 %vm122_vm0, %v197_v4 }
 0x1b1   :  { %4572 = vmatpush3.bf16.msra.mxu1 %v4760_v36  ;;  %4579 = vmatprep.mubr.msk.bf16.mxu1 %vm122_vm0, %v196_v0  ;;  %v5046_v36 = vmov 1983009808  }
 0x1b2   :  { %4573 = vmatprep.subr.bf16.mxu1 %v4761_v5  ;;  %4609 = vmatprep.mubr.msk.bf16.mxu0 %vm5045_vm1, %v5044_v29  ;;  %v511_v37 = vunpack.c.l.s4 %v5046_v36 }
 0x1b4   :  { %v512_v41 = vunpack.c.0.s8 %v511_v37 }
 0x1b5   :  { %4574 = vmatpush3.bf16.msra.mxu1 %v4761_v5 }
 0x1b6   :  { %4575 = vmatprep.subr.bf16.mxu1 %v4762_v6  ;;  %v5388_v47 = vsub.s32 %v512_v41, %v5385_v42 }
 0x1b9   :  { %4576 = vmatpush3.bf16.msra.mxu1 %v4762_v6 }
 0x1ba   :  { %4577 = vmatprep.subr.bf16.mxu1 %v4763_v7 }
 0x1bd   :  { %4578 = vmatpush3.bf16.msra.mxu1 %v4763_v7 }
 0x1be   :  { %4595 = vmatprep.subr.bf16.mxu1 %v5044_v29 }
 0x1c0   :  { %4580 = vmatmul.mubr.msk.bf16.vlgmr.msra.gmra.mrb[4].mxu1 %vm122_vm0, %v197_v4 }
 0x1c1   :  { %4597 = vmatprep.mubr.msk.bf16.mxu1 %vm5045_vm1, %v5044_v29 }
 0x283   :  { %v4569_v9 = vpop.f32.mrb[0].mxu1  ;;  %v4593_v10 = vpop.f32.mrb[0].mxu0 }
 0x284   :  { %v277_v11 = vpop.f32.mrb[1].mxu1  ;;  %v453_v12 = vpop.f32.mrb[1].mxu0  ;;  %v5326_v28 = vadd.f32 %v4569_v9, %v4370_v8  ;;  %v5354_v33 = vadd.f32 %v4593_v10, %v4384_v31 }
 0x285   :  { %v5282_v13 = vadd.f32 %v4370_v8, %v277_v11  ;;  %v4570_v14 = vpop.f32.mrb[2].mxu1  ;;  %v4594_v15 = vpop.f32.mrb[2].mxu0  ;;  %v5344_v32 = vadd.f32 %v4384_v31, %v453_v12 }
 0x286   :  { %v280_v16 = vpop.f32.mrb[3].mxu1  ;;  %v456_v17 = vpop.f32.mrb[3].mxu0  ;;  %v5338_v30 = vadd.f32 %v4570_v14, %v4370_v8  ;;  %v5374_v35 = vadd.f32 %v4594_v15, %v4384_v31 }
 0x287   :  { %v5284_v18 = vadd.f32 %v4370_v8, %v280_v16  ;;  %472 = vrot.lane.b32.xlu0 %v5282_v13, %s5041_s22  ;;  %v5356_v34 = vadd.f32 %v4384_v31, %v456_v17 }
 0x289   :  { %474 = vrot.lane.b32.xlu1 %v5284_v18, %s5041_s22 }
 0x293   :  { %v4581_v20 = vpop.f32.mrb[4].mxu1 }
 0x294   :  { %v365_v21 = vpop.f32.mrb[5].mxu1  ;;  %v5310_v26 = vadd.f32 %v4581_v20, %v4377_v19 }
 0x295   :  { %v5290_v22 = vadd.f32 %v4377_v19, %v365_v21  ;;  %v4582_v23 = vpop.f32.mrb[6].mxu1 }
 0x296   :  { %v368_v24 = vpop.f32.mrb[7].mxu1  ;;  %v5320_v27 = vadd.f32 %v4582_v23, %v4377_v19 }
 0x297   :  { %1076 = vrot.lane.b32.xlu1 %v5290_v22, %s5042_s5  ;;  %1064 = vrot.lane.b32.xlu0 %v5290_v22, %s5041_s22  ;;  %v5296_v25 = vadd.f32 %v4377_v19, %v368_v24 }
 0x29b   :  { %1066 = vrot.lane.b32.xlu1 %v5296_v25, %s5041_s22  ;;  %1088 = vrot.lane.b32.xlu0 %v5290_v22, %s5043_s24 }
 0x29f   :  { %1078 = vrot.lane.b32.xlu1 %v5296_v25, %s5042_s5  ;;  %484 = vrot.lane.b32.xlu0 %v5282_v13, %s5042_s5 }
 0x2a3   :  { %1090 = vrot.lane.b32.xlu1 %v5296_v25, %s5043_s24  ;;  %496 = vrot.lane.b32.xlu0 %v5282_v13, %s5043_s24 }
 0x2a7   :  { %486 = vrot.lane.b32.xlu1 %v5284_v18, %s5042_s5  ;;  %1068 = vrot.lane.b32.xlu0 %v5310_v26, %s5041_s22 }
 0x2ab   :  { %498 = vrot.lane.b32.xlu1 %v5284_v18, %s5043_s24  ;;  %1080 = vrot.lane.b32.xlu0 %v5310_v26, %s5042_s5 }
 0x2af   :  { %1070 = vrot.lane.b32.xlu1 %v5320_v27, %s5041_s22  ;;  %1092 = vrot.lane.b32.xlu0 %v5310_v26, %s5043_s24 }
 0x2b3   :  { %1082 = vrot.lane.b32.xlu1 %v5320_v27, %s5042_s5  ;;  %476 = vrot.lane.b32.xlu0 %v5326_v28, %s5041_s22 }
 0x2b7   :  { %1094 = vrot.lane.b32.xlu1 %v5320_v27, %s5043_s24  ;;  %488 = vrot.lane.b32.xlu0 %v5326_v28, %s5042_s5 }
 0x2bb   :  { %478 = vrot.lane.b32.xlu1 %v5338_v30, %s5041_s22  ;;  %500 = vrot.lane.b32.xlu0 %v5326_v28, %s5043_s24 }
 0x2bf   :  { %490 = vrot.lane.b32.xlu1 %v5338_v30, %s5042_s5  ;;  %1656 = vrot.lane.b32.xlu0 %v5344_v32, %s5041_s22 }
 0x2c3   :  { %502 = vrot.lane.b32.xlu1 %v5338_v30, %s5043_s24  ;;  %1680 = vrot.lane.b32.xlu0 %v5344_v32, %s5043_s24 }
 0x2c7   :  { %1658 = vrot.lane.b32.xlu1 %v5356_v34, %s5041_s22  ;;  %1660 = vrot.lane.b32.xlu0 %v5354_v33, %s5041_s22 }
 0x2cb   :  { %1668 = vrot.lane.b32.xlu1 %v5344_v32, %s5042_s5  ;;  %1684 = vrot.lane.b32.xlu0 %v5354_v33, %s5043_s24 }
 0x2cf   :  { %1670 = vrot.lane.b32.xlu1 %v5356_v34, %s5042_s5 }
 0x2d3   :  { %1682 = vrot.lane.b32.xlu1 %v5356_v34, %s5043_s24 }
 0x2d7   :  { %1662 = vrot.lane.b32.xlu1 %v5374_v35, %s5041_s22 }
 0x2db   :  { %1672 = vrot.lane.b32.xlu1 %v5354_v33, %s5042_s5 }
 0x2df   :  { %1674 = vrot.lane.b32.xlu1 %v5374_v35, %s5042_s5 }
 0x2f9   :  { %v473_v39 = vpop.permute.xlu0 %472 }
 0x2fb   :  { %v5382_v40 = vpop.permute.xlu1 %474 }
 0x309   :  { %v1077_v43 = vpop.permute.xlu1 %1076  ;;  %v1065_v44 = vpop.permute.xlu0 %1064 }
 0x30a   :  { %v1100_v48 = vcombine.low %v5290_v22, %v1077_v43  ;;  %v1101_v49 = vcombine.high %v5290_v22, %v1077_v43 }
 0x30c   :  { %v1108_v55 = vrot.slane %v1100_v48, %v5388_v47  ;;  %v1115_v56 = vrot.slane %v1101_v49, %v5388_v47 }
 0x30d   :  { %v1067_v50 = vpop.permute.xlu1 %1066  ;;  %v1089_v52 = vpop.permute.xlu0 %1088 }
 0x30e   :  { %v1116_v53 = vcombine.low %v1065_v44, %v1089_v52  ;;  %v1117_v54 = vcombine.high %v1065_v44, %v1089_v52 }
 0x310   :  { %v1124_v57 = vrot.slane %v1116_v53, %v5388_v47  ;;  %v1131_v58 = vrot.slane %v1117_v54, %v5388_v47 }
 0x311   :  { %v1079_v60 = vpop.permute.xlu1 %1078  ;;  %v485_v61 = vpop.permute.xlu0 %484 }
 0x312   :  { %v1132_v62 = vcombine.low %v1108_v55, %v1124_v57  ;;  %v1133_v63 = vcombine.high %v1108_v55, %v1124_v57  ;;  %v1148_v0 = vcombine.low %v1115_v56, %v1131_v58  ;;  %v1149_v1 = vcombine.high %v1115_v56, %v1131_v58 }
 0x313   :  { %v508_v2 = vcombine.low %v5282_v13, %v485_v61  ;;  %v509_v3 = vcombine.high %v5282_v13, %v485_v61  ;;  %v1168_v15 = vcombine.low %v5296_v25, %v1079_v60  ;;  %v1169_v16 = vcombine.high %v5296_v25, %v1079_v60 }
 0x314   :  { %v1140_v6 = vrot.slane %v1132_v62, %v5397_v59  ;;  %v1147_v7 = vrot.slane %v1133_v63, %v5397_v59  ;;  %v1156_v8 = vrot.slane %v1148_v0, %v5397_v59  ;;  %v1163_v9 = vrot.slane %v1149_v1, %v5397_v59 }
 0x315   :  { %v1091_v4 = vpop.permute.xlu1 %1090  ;;  %v497_v5 = vpop.permute.xlu0 %496  ;;  %v516_v23 = vrot.slane %v508_v2, %v5388_v47  ;;  %v523_v24 = vrot.slane %v509_v3, %v5388_v47  ;;  %v1176_v45 = vrot.slane %v1168_v15, %v5388_v47  ;;  %v1183_v46 = vrot.slane %v1169_v16, %v5388_v47 }
 0x316   :  { %v1184_v10 = vcombine.low %v1067_v50, %v1091_v4  ;;  %v1185_v11 = vcombine.high %v1067_v50, %v1091_v4  ;;  %v524_v12 = vcombine.low %v473_v39, %v497_v5  ;;  %v525_v14 = vcombine.high %v473_v39, %v497_v5 }
 0x317   :  { %v1372_v21 = vcombine.low %v1140_v6, %v1147_v7  ;;  %v4399_v22 = vcombine.high %v1140_v6, %v1147_v7  ;;  %v1388_v31 = vcombine.low %v1156_v8, %v1163_v9  ;;  %v4400_v36 = vcombine.high %v1156_v8, %v1163_v9 }
 0x318   :  { %v532_v13 = vrot.slane %v524_v12, %v5388_v47  ;;  %v539_v17 = vrot.slane %v525_v14, %v5388_v47  ;;  %v1192_v37 = vrot.slane %v1184_v10, %v5388_v47  ;;  %v1199_v39 = vrot.slane %v1185_v11, %v5388_v47 }
 0x319   :  { %v487_v19 = vpop.permute.xlu1 %486  ;;  %v5409_v20 = vpop.permute.xlu0 %1068  ;;  %v5422_v53 = vrot.slane %v1372_v21, %v5388_v47  ;;  %v5425_v54 = vrot.slane %v4399_v22, %v5388_v47  ;;  %v5428_v55 = vrot.slane %v1388_v31, %v5388_v47  ;;  %v5431_v56 = vrot.slane %v4400_v36, %v5388_v47 }
 0x31a   :  { %v540_v25 = vcombine.low %v516_v23, %v532_v13  ;;  %v541_v41 = vcombine.high %v516_v23, %v532_v13  ;;  %v556_v43 = vcombine.low %v523_v24, %v539_v17  ;;  %v557_v44 = vcombine.high %v523_v24, %v539_v17 }
 0x31b   :  { %v1200_v58 = vcombine.low %v1176_v45, %v1192_v37  ;;  %v1201_v60 = vcombine.high %v1176_v45, %v1192_v37  ;;  %v1216_v61 = vcombine.low %v1183_v46, %v1199_v39  ;;  %v1217_v62 = vcombine.high %v1183_v46, %v1199_v39 }
 0x31c   :  { %v548_v49 = vrot.slane %v540_v25, %v5397_v59  ;;  %v555_v50 = vrot.slane %v541_v41, %v5397_v59  ;;  %v564_v51 = vrot.slane %v556_v43, %v5397_v59  ;;  %v571_v52 = vrot.slane %v557_v44, %v5397_v59 }
 0x31d   :  { %v499_v48 = vpop.permute.xlu1 %498  ;;  %v1081_v57 = vpop.permute.xlu0 %1080  ;;  %v576_v63 = vcombine.low %v5284_v18, %v487_v19  ;;  %v577_v0 = vcombine.high %v5284_v18, %v487_v19  ;;  %v1404_v8 = vcombine.low %v5422_v53, %v5425_v54  ;;  %v1420_v9 = vcombine.low %v5428_v55, %v5431_v56 }
 0x31e   :  { %v780_v1 = vcombine.low %v548_v49, %v555_v50  ;;  %v4391_v2 = vcombine.high %v548_v49, %v555_v50  ;;  %v796_v3 = vcombine.low %v564_v51, %v571_v52  ;;  %v4392_v4 = vcombine.high %v564_v51, %v571_v52 }
 0x31f   :  { %v592_v5 = vcombine.low %v5382_v40, %v499_v48  ;;  %v593_v6 = vcombine.high %v5382_v40, %v499_v48  ;;  %v1208_v10 = vrot.slane %v1200_v58, %v5397_v59  ;;  %v1215_v18 = vrot.slane %v1201_v60, %v5397_v59 }
 0x320   :  { %v1224_v11 = vrot.slane %v1216_v61, %v5397_v59  ;;  %v1231_v12 = vrot.slane %v1217_v62, %v5397_v59  ;;  %v584_v14 = vrot.slane %v576_v63, %v5388_v47  ;;  %v591_v40 = vrot.slane %v577_v0, %v5388_v47 }
 0x321   :  { %v5437_v7 = vpop.permute.xlu1 %1070  ;;  %v600_v15 = vrot.slane %v592_v5, %v5388_v47  ;;  %v607_v16 = vrot.slane %v593_v6, %v5388_v47  ;;  %v1093_v13 = vpop.permute.xlu0 %1092  ;;  %v787_v17 = vrot.slane %v780_v1, %v5388_v47  ;;  %v795_v19 = vrot.slane %v4391_v2, %v5388_v47 }
 0x322   :  { %v803_v21 = vrot.slane %v796_v3, %v5388_v47  ;;  %v811_v22 = vrot.slane %v4392_v4, %v5388_v47  ;;  %v1236_v37 = vcombine.low %v5310_v26, %v1081_v57  ;;  %v1237_v39 = vcombine.high %v5310_v26, %v1081_v57 }
 0x323   :  { %v608_v23 = vcombine.low %v584_v14, %v600_v15  ;;  %v609_v24 = vcombine.high %v584_v14, %v600_v15  ;;  %v624_v31 = vcombine.low %v591_v40, %v607_v16  ;;  %v625_v36 = vcombine.high %v591_v40, %v607_v16 }
 0x324   :  { %v1252_v25 = vcombine.low %v5409_v20, %v1093_v13  ;;  %v1253_v41 = vcombine.high %v5409_v20, %v1093_v13  ;;  %v1440_v49 = vcombine.low %v1208_v10, %v1215_v18  ;;  %v4401_v50 = vcombine.high %v1208_v10, %v1215_v18 }
 0x325   :  { %v616_v43 = vrot.slane %v608_v23, %v5397_v59  ;;  %v623_v44 = vrot.slane %v609_v24, %v5397_v59  ;;  %v632_v45 = vrot.slane %v624_v31, %v5397_v59  ;;  %v639_v46 = vrot.slane %v625_v36, %v5397_v59  ;;  %v5463_v48 = vpop.permute.xlu1 %1082  ;;  %v5473_v40 = vpop.permute.xlu0 %476 }
 0x326   :  { %v1260_v51 = vrot.slane %v1252_v25, %v5388_v47  ;;  %v1267_v26 = vrot.slane %v1253_v41, %v5388_v47  ;;  %v1456_v52 = vcombine.low %v1224_v11, %v1231_v12  ;;  %v4402_v57 = vcombine.high %v1224_v11, %v1231_v12 }
 0x327   :  { %v848_v58 = vcombine.low %v616_v43, %v623_v44  ;;  %v4393_v20 = vcombine.high %v616_v43, %v623_v44  ;;  %v864_v60 = vcombine.low %v632_v45, %v639_v46  ;;  %v4394_v61 = vcombine.high %v632_v45, %v639_v46 }
 0x328   :  { %v1244_v62 = vrot.slane %v1236_v37, %v5388_v47  ;;  %v1251_v63 = vrot.slane %v1237_v39, %v5388_v47  ;;  %v812_v0 = vcombine.low %v787_v17, %v795_v19  ;;  %v813_v1 = vcombine.high %v787_v17, %v795_v19 }
 0x329   :  { %v828_v2 = vcombine.low %v803_v21, %v811_v22  ;;  %v829_v3 = vcombine.high %v803_v21, %v811_v22  ;;  %v1447_v18 = vrot.slane %v1440_v49, %v5388_v47  ;;  %v1455_v11 = vrot.slane %v4401_v50, %v5388_v47  ;;  %v1095_v15 = vpop.permute.xlu1 %1094 }
 0x32a   :  { %v1268_v4 = vcombine.low %v1244_v62, %v1260_v51  ;;  %v1269_v5 = vcombine.high %v1244_v62, %v1260_v51  ;;  %v1284_v6 = vcombine.low %v1251_v63, %v1267_v26  ;;  %v1285_v10 = vcombine.high %v1251_v63, %v1267_v26  ;;  %v489_v51 = vpop.permute.xlu0 %488 }
 0x32b   :  { %v855_v12 = vrot.slane %v848_v58, %v5388_v47  ;;  %v863_v14 = vrot.slane %v4393_v20, %v5388_v47  ;;  %v1463_v16 = vrot.slane %v1456_v52, %v5388_v47  ;;  %v1471_v13 = vrot.slane %v4402_v57, %v5388_v47 }
 0x32c   :  { %v871_v17 = vrot.slane %v864_v60, %v5388_v47  ;;  %v879_v19 = vrot.slane %v4394_v61, %v5388_v47  ;;  %v5480_v21 = vrot.slane %v812_v0, %v5397_v59  ;;  %v5483_v22 = vrot.slane %v813_v1, %v5397_v59 }
 0x32d   :  { %v5486_v23 = vrot.slane %v828_v2, %v5397_v59  ;;  %v5489_v24 = vrot.slane %v829_v3, %v5397_v59  ;;  %v5492_v31 = vrot.slane %v1268_v4, %v5397_v59  ;;  %v5495_v36 = vrot.slane %v1269_v5, %v5397_v59  ;;  %v5521_v57 = vpop.permute.xlu1 %478 }
 0x32e   :  { %v5498_v37 = vrot.slane %v1284_v6, %v5397_v59  ;;  %v5501_v39 = vrot.slane %v1285_v10, %v5397_v59  ;;  %v880_v25 = vcombine.low %v855_v12, %v863_v14  ;;  %v881_v41 = vcombine.high %v855_v12, %v863_v14 }
 0x32f   :  { %v1304_v43 = vcombine.low %v5320_v27, %v5463_v48  ;;  %v1305_v44 = vcombine.high %v5320_v27, %v5463_v48  ;;  %v896_v45 = vcombine.low %v871_v17, %v879_v19  ;;  %v897_v46 = vcombine.high %v871_v17, %v879_v19  ;;  %v501_v17 = vpop.permute.xlu0 %500 }
 0x330   :  { %v1320_v49 = vcombine.low %v5437_v7, %v1095_v15  ;;  %v1321_v50 = vcombine.high %v5437_v7, %v1095_v15  ;;  %v5513_v26 = vrot.slane %v1404_v8, %v5397_v59  ;;  %v5519_v52 = vrot.slane %v1420_v9, %v5397_v59 }
 0x331   :  { %v1472_v27 = vcombine.low %v1447_v18, %v1455_v11  ;;  %v1488_v48 = vcombine.low %v1463_v16, %v1471_v13  ;;  %v1508_v7 = vcombine.low %v5492_v31, %v5495_v36  ;;  %v4403_v58 = vcombine.high %v5492_v31, %v5495_v36  ;;  %v491_v19 = vpop.permute.xlu1 %490 }
 0x332   :  { %v1524_v8 = vcombine.low %v5498_v37, %v5501_v39  ;;  %v1405_v20 = vcombine.high %v5422_v53, %v5425_v54  ;;  %v5532_v60 = vrot.slane %v880_v25, %v5397_v59  ;;  %v5535_v9 = vrot.slane %v881_v41, %v5397_v59 }
 0x333   :  { %v4404_v61 = vcombine.high %v5498_v37, %v5501_v39  ;;  %v1312_v62 = vrot.slane %v1304_v43, %v5388_v47  ;;  %v1328_v63 = vrot.slane %v1320_v49, %v5388_v47  ;;  %v1480_v0 = vrot.slane %v1472_v27, %v5397_v59 }
 0x334   :  { %v1496_v1 = vrot.slane %v1488_v48, %v5397_v59  ;;  %v1421_v53 = vcombine.high %v5428_v55, %v5431_v56  ;;  %v1335_v54 = vrot.slane %v1321_v50, %v5388_v47  ;;  %v644_v2 = vcombine.low %v5326_v28, %v489_v51 }
 0x335   :  { %v1436_v3 = vcombine.low %v5513_v26, %v5519_v52  ;;  %v5550_v4 = vrot.slane %v1405_v20, %v5397_v59  ;;  %v1473_v10 = vcombine.high %v1447_v18, %v1455_v11  ;;  %v1489_v12 = vcombine.high %v1463_v16, %v1471_v13 }
 0x336   :  { %v1504_v5 = vcombine.low %v1480_v0, %v1496_v1  ;;  %v5553_v6 = vrot.slane %v1421_v53, %v5397_v59  ;;  %v5556_v14 = vrot.slane %v896_v45, %v5397_v59  ;;  %v5559_v55 = vrot.slane %v897_v46, %v5397_v59 }
 0x337   :  { %v1319_v56 = vrot.slane %v1305_v44, %v5388_v47  ;;  %v645_v15 = vcombine.high %v5326_v28, %v489_v51  ;;  %v1336_v25 = vcombine.low %v1312_v62, %v1328_v63  ;;  %v5564_v43 = vrot.slane %v1473_v10, %v5397_v59 }
 0x338   :  { %v1644_v41 = vpack.c.bf16 %v1504_v5, %v1436_v3  ;;  %v5567_v18 = vrot.slane %v1489_v12, %v5397_v59  ;;  %v1337_v11 = vcombine.high %v1312_v62, %v1328_v63  ;;  %v652_v13 = vrot.slane %v644_v2, %v5388_v47  ;;  %v503_v5 = vpop.permute.xlu1 %502 }
 0x339   :  { %v1352_v16 = vcombine.low %v1319_v56, %v1335_v54  ;;  %v1438_v45 = vcombine.low %v5550_v4, %v5553_v6  ;;  %v660_v46 = vcombine.low %v5473_v40, %v501_v17  ;;  %v661_v49 = vcombine.high %v5473_v40, %v501_v17 }
 0x33a   :  { %v2249_v44 = vsel %vm2244_vm2, %v1644_v41, 0  ;;  %v1506_v28 = vcombine.low %v5564_v43, %v5567_v18  ;;  %v1353_v50 = vcombine.high %v1319_v56, %v1335_v54  ;;  %v659_v51 = vrot.slane %v645_v15, %v5388_v47 }
 0x33b   :  { %4596 = vmatpush3.bf16.xpose.msra.mxu1 %v2249_v44  ;;  %v844_v27 = vcombine.low %v5480_v21, %v5486_v23  ;;  %v912_v48 = vcombine.low %v5532_v60, %v5556_v14  ;;  %v5583_v20 = vrot.slane %v1336_v25, %v5397_v59  ;;  %v668_v63 = vrot.slane %v660_v46, %v5388_v47 }
 0x33c   :  { %v1646_v62 = vpack.c.bf16 %v1506_v28, %v1438_v45  ;;  %v675_v53 = vrot.slane %v661_v49, %v5388_v47  ;;  %4601 = vmatprep.subr.bf16.mxu1 %v5044_v29  ;;  %v1351_v40 = vrot.slane %v1337_v11, %v5397_v59  ;;  %v5590_v54 = vrot.slane %v1352_v16, %v5397_v59  ;;  %v5608_v49 = vpop.permute.xlu0 %1656 }
 0x33d   :  { %v712_v2 = vcombine.low %v5338_v30, %v491_v19  ;;  %v1052_v3 = vpack.c.bf16 %v912_v48, %v844_v27  ;;  %v676_v12 = vcombine.low %v652_v13, %v668_v63  ;;  %v677_v56 = vcombine.high %v652_v13, %v668_v63 }
 0x33e   :  { %v2343_v10 = vsel %vm2244_vm2, %v1646_v62, 0  ;;  %v914_v15 = vcombine.low %v5535_v9, %v5559_v55  ;;  %v5597_v17 = vrot.slane %v1353_v50, %v5397_v59  ;;  %v713_v25 = vcombine.high %v5338_v30, %v491_v19 }
 0x33f   :  { %4608 = vmatpush3.bf16.xpose.msra.mxu0 %v2343_v10  ;;  %v1437_v41 = vcombine.high %v5513_v26, %v5519_v52  ;;  %v1505_v11 = vcombine.high %v1480_v0, %v1496_v1  ;;  %v692_v16 = vcombine.low %v659_v51, %v675_v53  ;;  %v693_v45 = vcombine.high %v659_v51, %v675_v53 }
 0x340   :  { %v846_v44 = vcombine.low %v5483_v22, %v5489_v24  ;;  %v728_v13 = vcombine.low %v5521_v57, %v503_v5  ;;  %4619 = vmatprep.subr.bf16.mxu0 %v5044_v29  ;;  %v684_v28 = vrot.slane %v676_v12, %v5397_v59  ;;  %v691_v46 = vrot.slane %v677_v56, %v5397_v59 }
 0x341   :  { %v1645_v30 = vpack.c.bf16 %v1505_v11, %v1437_v41  ;;  %v729_v19 = vcombine.high %v5521_v57, %v503_v5  ;;  %v1576_v26 = vcombine.low %v5583_v20, %v1351_v40  ;;  %v720_v52 = vrot.slane %v712_v2, %v5388_v47  ;;  %v5623_v2 = vpop.permute.xlu1 %1658 }
 0x342   :  { %4598 = vmatmul.mubr.msk.bf16.vlgmr.msra.gmra.mrb[8].mxu1 %vm2244_vm2, %v1052_v3  ;;  %v1054_v0 = vpack.c.bf16 %v914_v15, %v846_v44  ;;  %v736_v1 = vrot.slane %v728_v13, %v5388_v47  ;;  %v4405_v50 = vcombine.high %v5583_v20, %v1351_v40  ;;  %v727_v51 = vrot.slane %v713_v25, %v5388_v47 }
 0x343   :  { %v2296_v27 = vsel %vm2244_vm2, %v1645_v30, 0  ;;  %v743_v48 = vrot.slane %v729_v19, %v5388_v47  ;;  %4603 = vmatprep.mubr.msk.bf16.mxu1 %vm5045_vm1, %v5044_v29  ;;  %v700_v57 = vrot.slane %v692_v16, %v5397_v59  ;;  %v707_v62 = vrot.slane %v693_v45, %v5397_v59 }
 0x344   :  { %4602 = vmatpush3.bf16.xpose.msra.mxu1 %v2296_v27  ;;  %v744_v63 = vcombine.low %v720_v52, %v736_v1  ;;  %v745_v53 = vcombine.high %v720_v52, %v736_v1  ;;  %v916_v3 = vcombine.low %v684_v28, %v691_v46  ;;  %v4395_v20 = vcombine.high %v684_v28, %v691_v46 }
 0x345   :  { %v760_v40 = vcombine.low %v727_v51, %v743_v48  ;;  %v761_v5 = vcombine.high %v727_v51, %v743_v48  ;;  %4613 = vmatprep.subr.bf16.mxu1 %v5044_v29  ;;  %v5630_v10 = vrot.slane %v1508_v7, %v5388_v47  ;;  %v5636_v12 = vrot.slane %v4403_v58, %v5388_v47  ;;  %v1681_v58 = vpop.permute.xlu0 %1680  ;;  %v1669_v30 = vpop.permute.xlu1 %1668 }
 0x346   :  { %4610 = vmatmul.mubr.msk.bf16.vlgmr.msra.gmra.mrb[4].mxu0 %vm2244_vm2, %v1054_v0  ;;  %v752_v56 = vrot.slane %v744_v63, %v5397_v59  ;;  %v759_v15 = vrot.slane %v745_v53, %v5397_v59  ;;  %v5645_v25 = vrot.slane %v1524_v8, %v5388_v47  ;;  %v5651_v7 = vrot.slane %v4404_v61, %v5388_v47 }
 0x347   :  { %v768_v31 = vrot.slane %v760_v40, %v5397_v59  ;;  %v775_v36 = vrot.slane %v761_v5, %v5397_v59  ;;  %4621 = vmatprep.mubr.msk.bf16.mxu0 %vm5045_vm1, %v5044_v29  ;;  %v1592_v41 = vcombine.low %v5590_v54, %v5597_v17  ;;  %v4406_v8 = vcombine.high %v5590_v54, %v5597_v17 }
 0x348   :  { %v932_v11 = vcombine.low %v700_v57, %v707_v62  ;;  %v4396_v16 = vcombine.high %v700_v57, %v707_v62  ;;  %v5662_v37 = vrot.slane %v1576_v26, %v5388_v47  ;;  %v5665_v39 = vrot.slane %v4405_v50, %v5388_v47 }
 0x349   :  { %v923_v61 = vrot.slane %v916_v3, %v5388_v47  ;;  %v931_v45 = vrot.slane %v4395_v20, %v5388_v47  ;;  %v984_v44 = vcombine.low %v752_v56, %v759_v15  ;;  %v4397_v13 = vcombine.high %v752_v56, %v759_v15  ;;  %v1671_v53 = vpop.permute.xlu1 %1670 }
 0x34a   :  { %v1708_v28 = vcombine.low %v5608_v49, %v1681_v58  ;;  %v1709_v46 = vcombine.high %v5608_v49, %v1681_v58  ;;  %v1000_v54 = vcombine.low %v768_v31, %v775_v36  ;;  %v4398_v17 = vcombine.high %v768_v31, %v775_v36 }
 0x34b   :  { %v845_v19 = vcombine.high %v5480_v21, %v5486_v23  ;;  %v913_v26 = vcombine.high %v5532_v60, %v5556_v14  ;;  %v5676_v52 = vrot.slane %v932_v11, %v5388_v47  ;;  %v5679_v0 = vrot.slane %v4396_v16, %v5388_v47 }
 0x34c   :  { %v1439_v1 = vcombine.high %v5550_v4, %v5553_v6  ;;  %v1507_v49 = vcombine.high %v5564_v43, %v5567_v18  ;;  %v948_v50 = vcombine.low %v923_v61, %v931_v45  ;;  %v949_v51 = vcombine.high %v923_v61, %v931_v45 }
 0x34d   :  { %v1053_v27 = vpack.c.bf16 %v913_v26, %v845_v19  ;;  %v1692_v21 = vcombine.low %v5344_v32, %v1669_v30  ;;  %v5687_v23 = vrot.slane %v984_v44, %v5388_v47  ;;  %v5690_v60 = vrot.slane %v4397_v13, %v5388_v47 }
 0x34e   :  { %v1647_v14 = vpack.c.bf16 %v1507_v49, %v1439_v1  ;;  %v1693_v48 = vcombine.high %v5344_v32, %v1669_v30  ;;  %v5694_v57 = vrot.slane %v1592_v41, %v5388_v47  ;;  %v5697_v4 = vrot.slane %v1000_v54, %v5388_v47  ;;  %v1683_v1 = vpop.permute.xlu1 %1682 }
 0x34f   :  { %v5700_v6 = vrot.slane %v4398_v17, %v5388_v47  ;;  %4604 = vmatmul.mubr.msk.bf16.vlgmr.msra.gmra.mrb[12].mxu1 %vm2244_vm2, %v1053_v27  ;;  %v1700_v43 = vrot.slane %v1692_v21, %v5388_v47  ;;  %v5705_v18 = vrot.slane %v4406_v8, %v5388_v47  ;;  %v1540_v63 = vcombine.low %v5630_v10, %v5636_v12 }
 0x350   :  { %v2390_v62 = vsel %vm2244_vm2, %v1647_v14, 0  ;;  %v1707_v32 = vrot.slane %v1693_v48, %v5388_v47  ;;  %4615 = vmatprep.mubr.msk.bf16.mxu1 %vm5045_vm1, %v5044_v29  ;;  %v964_v3 = vcombine.low %v5676_v52, %v5679_v0  ;;  %v965_v20 = vcombine.high %v5676_v52, %v5679_v0 }
 0x351   :  { %v1716_v40 = vrot.slane %v1708_v28, %v5388_v47  ;;  %4614 = vmatpush3.bf16.xpose.msra.mxu1 %v2390_v62  ;;  %v1556_v5 = vcombine.low %v5645_v25, %v5651_v7  ;;  %v5721_v56 = vrot.slane %v948_v50, %v5397_v59  ;;  %v5724_v15 = vrot.slane %v949_v51, %v5397_v59 }
 0x352   :  { %v1016_v31 = vcombine.low %v5687_v23, %v5690_v60  ;;  %v1723_v36 = vrot.slane %v1709_v46, %v5388_v47  ;;  %4625 = vmatprep.subr.bf16.mxu1 %v5044_v29  ;;  %v1032_v58 = vcombine.low %v5697_v4, %v5700_v6  ;;  %v1608_v11 = vcombine.low %v5662_v37, %v5665_v39 }
 0x353   :  { %v1724_v41 = vcombine.low %v1700_v43, %v1716_v40  ;;  %v1725_v8 = vcombine.high %v1700_v43, %v1716_v40  ;;  %v1548_v61 = vrot.slane %v1540_v63, %v5397_v59  ;;  %v1564_v45 = vrot.slane %v1556_v5, %v5397_v59 }
 0x354   :  { %v1740_v16 = vcombine.low %v1707_v32, %v1723_v36  ;;  %v1624_v44 = vcombine.low %v5694_v57, %v5705_v18  ;;  %v972_v13 = vrot.slane %v964_v3, %v5397_v59  ;;  %v1017_v28 = vcombine.high %v5687_v23, %v5690_v60 }
 0x355   :  { %v1033_v46 = vcombine.high %v5697_v4, %v5700_v6  ;;  %v1616_v30 = vrot.slane %v1608_v11, %v5397_v59  ;;  %v1024_v54 = vrot.slane %v1016_v31, %v5397_v59  ;;  %v1741_v17 = vcombine.high %v1707_v32, %v1723_v36 }
 0x356   :  { %v1632_v19 = vrot.slane %v1624_v44, %v5397_v59  ;;  %v1760_v26 = vcombine.low %v5356_v34, %v1671_v53  ;;  %v1040_v49 = vrot.slane %v1032_v58, %v5397_v59  ;;  %v5749_v50 = vrot.slane %v1724_v41, %v5397_v59 }
 0x357   :  { %v5752_v51 = vrot.slane %v1725_v8, %v5397_v59  ;;  %v1761_v27 = vcombine.high %v5356_v34, %v1671_v53  ;;  %v5756_v21 = vrot.slane %v1740_v16, %v5397_v59  ;;  %v1572_v14 = vcombine.low %v1548_v61, %v1564_v45 }
 0x358   :  { %v1640_v48 = vcombine.low %v1616_v30, %v1632_v19  ;;  %v847_v43 = vcombine.high %v5483_v22, %v5489_v24  ;;  %v915_v62 = vcombine.high %v5535_v9, %v5559_v55  ;;  %v1573_v32 = vcombine.high %v1548_v61, %v1564_v45 }
 0x359   :  { %v1641_v63 = vcombine.high %v1616_v30, %v1632_v19  ;;  %v1776_v3 = vcombine.low %v5623_v2, %v1683_v1  ;;  %v5764_v40 = vrot.slane %v1741_v17, %v5397_v59  ;;  %v1768_v34 = vrot.slane %v1760_v26, %v5388_v47 }
 0x35a   :  { %v1648_v5 = vpack.c.bf16 %v1640_v48, %v1572_v14  ;;  %v1777_v53 = vcombine.high %v5623_v2, %v1683_v1  ;;  %v1775_v31 = vrot.slane %v1761_v27, %v5388_v47  ;;  %v1055_v36 = vpack.c.bf16 %v915_v62, %v847_v43 }
 0x35b   :  { %v1649_v58 = vpack.c.bf16 %v1641_v63, %v1573_v32  ;;  %v1784_v22 = vrot.slane %v1776_v3, %v5388_v47  ;;  %v1048_v55 = vcombine.low %v1024_v54, %v1040_v49  ;;  %v1049_v41 = vcombine.high %v1024_v54, %v1040_v49 }
 0x35c   :  { %v2437_v24 = vsel %vm2244_vm2, %v1648_v5, 0  ;;  %v1791_v9 = vrot.slane %v1777_v53, %v5388_v47  ;;  %4616 = vmatmul.mubr.msk.bf16.vlgmr.msra.gmra.mrb[16].mxu1 %vm2244_vm2, %v1055_v36  ;;  %v1541_v2 = vcombine.high %v5630_v10, %v5636_v12  ;;  %v980_v44 = vcombine.low %v5721_v56, %v972_v13 }
 0x35d   :  { %4620 = vmatpush3.bf16.xpose.msra.mxu0 %v2437_v24  ;;  %v2484_v8 = vsel %vm2244_vm2, %v1649_v58, 0  ;;  %v1792_v11 = vcombine.low %v1768_v34, %v1784_v22  ;;  %v1793_v16 = vcombine.high %v1768_v34, %v1784_v22  ;;  %4627 = vmatprep.mubr.msk.bf16.mxu1 %vm5045_vm1, %v5044_v29  ;;  %v981_v17 = vcombine.high %v5721_v56, %v972_v13 }
 0x35e   :  { %4626 = vmatpush3.bf16.xpose.msra.mxu1 %v2484_v8  ;;  %v1808_v61 = vcombine.low %v1775_v31, %v1791_v9  ;;  %v1809_v45 = vcombine.high %v1775_v31, %v1791_v9  ;;  %4631 = vmatprep.subr.bf16.mxu0 %v5044_v29  ;;  %v1557_v19 = vcombine.high %v5645_v25, %v5651_v7 }
 0x35f   :  { %v1800_v30 = vrot.slane %v1792_v11, %v5397_v59  ;;  %v1807_v54 = vrot.slane %v1793_v16, %v5397_v59  ;;  %v1056_v10 = vpack.c.bf16 %v1048_v55, %v980_v44  ;;  %v1555_v12 = vrot.slane %v1541_v2, %v5397_v59  ;;  %4637 = vmatprep.subr.bf16.mxu1 %v5044_v29 }
 0x360   :  { %v1609_v26 = vcombine.high %v5662_v37, %v5665_v39  ;;  %v1625_v1 = vcombine.high %v5694_v57, %v5705_v18  ;;  %v1816_v49 = vrot.slane %v1808_v61, %v5397_v59  ;;  %v1823_v27 = vrot.slane %v1809_v45, %v5397_v59 }
 0x361   :  { %v1057_v14 = vpack.c.bf16 %v1049_v41, %v981_v17  ;;  %v1571_v56 = vrot.slane %v1557_v19, %v5397_v59  ;;  %v1964_v25 = vcombine.low %v5749_v50, %v5752_v51  ;;  %v4407_v7 = vcombine.high %v5749_v50, %v5752_v51 }
 0x362   :  { %v1623_v37 = vrot.slane %v1609_v26, %v5397_v59  ;;  %v1639_v39 = vrot.slane %v1625_v1, %v5397_v59  ;;  %v1980_v57 = vcombine.low %v5756_v21, %v5764_v40  ;;  %v4408_v18 = vcombine.high %v5756_v21, %v5764_v40 }
 0x363   :  { %v2032_v13 = vcombine.low %v1800_v30, %v1807_v54  ;;  %v4409_v48 = vcombine.high %v1800_v30, %v1807_v54  ;;  %v1574_v43 = vcombine.low %v1555_v12, %v1571_v56  ;;  %v1575_v32 = vcombine.high %v1555_v12, %v1571_v56 }
 0x364   :  { %4622 = vmatmul.mubr.msk.bf16.vlgmr.msra.gmra.mrb[8].mxu0 %vm2244_vm2, %v1056_v10  ;;  %v1642_v62 = vcombine.low %v1623_v37, %v1639_v39  ;;  %v1643_v63 = vcombine.high %v1623_v37, %v1639_v39  ;;  %v979_v50 = vrot.slane %v965_v20, %v5397_v59  ;;  %v1031_v51 = vrot.slane %v1017_v28, %v5397_v59 }
 0x365   :  { %v2048_v3 = vcombine.low %v1816_v49, %v1823_v27  ;;  %v4410_v21 = vcombine.high %v1816_v49, %v1823_v27  ;;  %4628 = vmatmul.mubr.msk.bf16.vlgmr.msra.gmra.mrb[20].mxu1 %vm2244_vm2, %v1057_v14  ;;  %v1047_v40 = vrot.slane %v1033_v46, %v5397_v59  ;;  %4633 = vmatprep.mubr.msk.bf16.mxu0 %vm5045_vm1, %v5044_v29 }
 0x366   :  { %v1650_v5 = vpack.c.bf16 %v1642_v62, %v1574_v43  ;;  %v1651_v34 = vpack.c.bf16 %v1643_v63, %v1575_v32  ;;  %4639 = vmatprep.mubr.msk.bf16.mxu1 %vm5045_vm1, %v5044_v29  ;;  %v1971_v52 = vrot.slane %v1964_v25, %v5388_v47  ;;  %v1979_v0 = vrot.slane %v4407_v7, %v5388_v47 }
 0x367   :  { %v1987_v23 = vrot.slane %v1980_v57, %v5388_v47  ;;  %v1995_v60 = vrot.slane %v4408_v18, %v5388_v47  ;;  %v2039_v20 = vrot.slane %v2032_v13, %v5388_v47  ;;  %v2047_v4 = vrot.slane %v4409_v48, %v5388_v47 }
 0x368   :  { %v2531_v6 = vsel %vm2244_vm2, %v1650_v5, 0  ;;  %v2578_v28 = vsel %vm2244_vm2, %v1651_v34, 0  ;;  %v2055_v46 = vrot.slane %v2048_v3, %v5388_v47  ;;  %v2063_v53 = vrot.slane %v4410_v21, %v5388_v47 }
 0x369   :  { %4632 = vmatpush3.bf16.xpose.msra.mxu0 %v2531_v6  ;;  %4638 = vmatpush3.bf16.xpose.msra.mxu1 %v2578_v28  ;;  %v1050_v31 = vcombine.low %v1031_v51, %v1047_v40  ;;  %v1051_v36 = vcombine.high %v1031_v51, %v1047_v40  ;;  %v1996_v58 = vcombine.low %v1971_v52, %v1979_v0  ;;  %v2625_v13 = vand.u32 127, %v513_v38 }
 0x36a   :  { %4643 = vmatprep.subr.bf16.mxu0 %v5044_v29  ;;  %4649 = vmatprep.subr.bf16.mxu1 %v5044_v29  ;;  %v982_v22 = vcombine.low %v5724_v15, %v979_v50  ;;  %v983_v24 = vcombine.high %v5724_v15, %v979_v50  ;;  %v2012_v9 = vcombine.low %v1987_v23, %v1995_v60  ;;  %v2623_v48 = vadd.s32 8, %v5385_v42 }
 0x36b   :  { %v2064_v55 = vcombine.low %v2039_v20, %v2047_v4  ;;  %v2004_v41 = vrot.slane %v1996_v58, %v5397_v59  ;;  %v2080_v8 = vcombine.low %v2055_v46, %v2063_v53  ;;  %v1997_v44 = vcombine.high %v1971_v52, %v1979_v0 }
 0x36c   :  { %v1058_v11 = vpack.c.bf16 %v1050_v31, %v982_v22  ;;  %v1059_v16 = vpack.c.bf16 %v1051_v36, %v983_v24  ;;  %v2020_v2 = vrot.slane %v2012_v9, %v5397_v59  ;;  %v2013_v30 = vcombine.high %v1987_v23, %v1995_v60 }
 0x36d   :  { %v2072_v61 = vrot.slane %v2064_v55, %v5397_v59  ;;  %v2088_v45 = vrot.slane %v2080_v8, %v5397_v59  ;;  %v2065_v54 = vcombine.high %v2039_v20, %v2047_v4  ;;  %v2011_v12 = vrot.slane %v1997_v44, %v5397_v59 }
 0x36e   :  { %v2028_v15 = vcombine.low %v2004_v41, %v2020_v2  ;;  %v2029_v19 = vcombine.high %v2004_v41, %v2020_v2  ;;  %v2027_v26 = vrot.slane %v2013_v30, %v5397_v59  ;;  %v2081_v49 = vcombine.high %v2055_v46, %v2063_v53 }
 0x36f   :  { %v2096_v17 = vcombine.low %v2072_v61, %v2088_v45  ;;  %v2097_v10 = vcombine.high %v2072_v61, %v2088_v45  ;;  %v2079_v1 = vrot.slane %v2065_v54, %v5397_v59  ;;  %vm5859_vm3 = vcmp.ge.s32.totalorder %v5385_v42, %v2625_v13 }
 0x370   :  { %4634 = vmatmul.mubr.msk.bf16.vlgmr.msra.gmra.mrb[12].mxu0 %vm2244_vm2, %v1058_v11  ;;  %4640 = vmatmul.mubr.msk.bf16.vlgmr.msra.gmra.mrb[24].mxu1 %vm2244_vm2, %v1059_v16  ;;  %v2030_v56 = vcombine.low %v2011_v12, %v2027_v26  ;;  %v2095_v25 = vrot.slane %v2081_v49, %v5397_v59  ;;  %v2031_v7 = vcombine.high %v2011_v12, %v2027_v26 }
 0x371   :  { %4645 = vmatprep.mubr.msk.bf16.mxu0 %vm5045_vm1, %v5044_v29  ;;  %4651 = vmatprep.mubr.msk.bf16.mxu1 %vm5045_vm1, %v5044_v29  ;;  %v2236_v27 = vpack.c.bf16 %v2096_v17, %v2028_v15  ;;  %v2237_v14 = vpack.c.bf16 %v2097_v10, %v2029_v19  ;;  %vm5863_vm4 = vcmp.ge.s32.totalorder %v2623_v48, %v2625_v13 }
 0x372   :  { %v2098_v37 = vcombine.low %v2079_v1, %v2095_v25  ;;  %v2099_v39 = vcombine.high %v2079_v1, %v2095_v25 }
 0x373   :  { %4644 = vmatpush3.bf16.msra.mxu0 %v2236_v27  ;;  %4650 = vmatpush3.bf16.msra.mxu1 %v2237_v14 }
 0x374   :  { %4655 = vmatprep.subr.bf16.mxu0 %v5044_v29  ;;  %4661 = vmatprep.subr.bf16.mxu1 %v5044_v29  ;;  %v5852_v57 = vpack.c.bf16 %v2098_v37, %v2030_v56  ;;  %v5854_v18 = vpack.c.bf16 %v2099_v39, %v2031_v7 }
 0x415   :  { %v2285_v62 = vpop.f32.mrb[8].mxu1 }
 0x416   :  { %v5869_v63 = vsel %vm5859_vm3, %v2285_v62, -1e+09  ;;  %v4599_v50 = vpop.f32.mrb[9].mxu1 }
 0x417   :  { %v2288_v51 = vpop.f32.mrb[10].mxu1  ;;  %v2644_v38 = vsel %vm2244_vm2, %v5869_v63, -inf }
 0x418   :  { %v5875_v3 = vsel %vm5863_vm4, %v2288_v51, -1e+09  ;;  %2645 = vmax.xlane.f32.xlu0 %v2644_v38  ;;  %v4600_v21 = vpop.f32.mrb[11].mxu1 }
 0x419   :  { %v2379_v40 = vpop.f32.mrb[4].mxu0  ;;  %v2647_v5 = vsel %vm2244_vm2, %v5875_v3, -inf }
 0x41a   :  { %v5881_v34 = vsel %vm5859_vm3, %v2379_v40, -1e+09  ;;  %v4611_v52 = vpop.f32.mrb[5].mxu0  ;;  %2648 = vmax.xlane.f32.xlu1 %v2647_v5 }
 0x41b   :  { %v2382_v0 = vpop.f32.mrb[6].mxu0  ;;  %v2656_v23 = vsel %vm2244_vm2, %v5881_v34, -inf }
 0x41c   :  { %v5887_v60 = vsel %vm5863_vm4, %v2382_v0, -1e+09  ;;  %v4612_v20 = vpop.f32.mrb[7].mxu0  ;;  %2657 = vmax.xlane.f32.xlu0 %v2656_v23  ;;  %v5965_v23 = vpop.permute.xlu1 %1662 }
 0x41d   :  { %v2659_v4 = vsel %vm2244_vm2, %v5887_v60, -inf  ;;  %v1661_v20 = vpop.permute.xlu0 %1660 }
 0x41e   :  { %2660 = vmax.xlane.f32.xlu1 %v2659_v4 }
 0x420   :  { %v1673_v4 = vpop.permute.xlu1 %1672 }
 0x422   :  { %v2332_v6 = vpop.f32.mrb[12].mxu1 }
 0x423   :  { %v5893_v28 = vsel %vm5859_vm3, %v2332_v6, -1e+09  ;;  %v4605_v46 = vpop.f32.mrb[13].mxu1  ;;  %v1685_v6 = vpop.permute.xlu0 %1684 }
 0x424   :  { %v2335_v53 = vpop.f32.mrb[14].mxu1  ;;  %v2650_v31 = vsel %vm2244_vm2, %v5893_v28, -inf  ;;  %v5967_v46 = vpop.permute.xlu1 %1674 }
 0x425   :  { %2651 = vmax.xlane.f32.xlu0 %v2650_v31  ;;  %v4606_v36 = vpop.f32.mrb[15].mxu1  ;;  %v5905_v45 = vsel %vm5863_vm4, %v2335_v53, -1e+09 }
 0x426   :  { %v2653_v10 = vsel %vm2244_vm2, %v5905_v45, -inf }
 0x42f   :  { %v2426_v58 = vpop.f32.mrb[16].mxu1 }
 0x430   :  { %v4617_v22 = vpop.f32.mrb[17].mxu1  ;;  %v5921_v12 = vsel %vm5859_vm3, %v2426_v58, -1e+09 }
 0x431   :  { %v2429_v24 = vpop.f32.mrb[18].mxu1  ;;  %v2662_v1 = vsel %vm2244_vm2, %v5921_v12, -inf }
 0x432   :  { %v4618_v9 = vpop.f32.mrb[19].mxu1  ;;  %v5929_v49 = vsel %vm5863_vm4, %v2429_v24, -1e+09 }
 0x433   :  { %v2665_v39 = vsel %vm2244_vm2, %v5929_v49, -inf }
 0x437   :  { %v2473_v55 = vpop.f32.mrb[8].mxu0 }
 0x438   :  { %v5899_v41 = vsel %vm5859_vm3, %v2473_v55, -1e+09  ;;  %v2520_v8 = vpop.f32.mrb[20].mxu1  ;;  %v4623_v11 = vpop.f32.mrb[9].mxu0 }
 0x439   :  { %v4629_v16 = vpop.f32.mrb[21].mxu1  ;;  %v2476_v2 = vpop.f32.mrb[10].mxu0  ;;  %v2668_v61 = vsel %vm2244_vm2, %v5899_v41, -inf  ;;  %v5935_v13 = vsel %vm5859_vm3, %v2520_v8, -1e+09 }
 0x43a   :  { %v5909_v44 = vsel %vm5863_vm4, %v2476_v2, -1e+09  ;;  %v2523_v30 = vpop.f32.mrb[22].mxu1  ;;  %2669 = vmax.xlane.f32.xlu0 %v2668_v61  ;;  %v4624_v54 = vpop.f32.mrb[11].mxu0  ;;  %v2674_v51 = vsel %vm2244_vm2, %v5935_v13, -inf }
 0x43b   :  { %v4630_v15 = vpop.f32.mrb[23].mxu1  ;;  %v2671_v17 = vsel %vm2244_vm2, %v5909_v44, -inf  ;;  %v5915_v19 = vsel %vm5863_vm4, %v2523_v30, -1e+09 }
 0x43c   :  { %2672 = vmax.xlane.f32.xlu1 %v2671_v17  ;;  %v2677_v26 = vsel %vm2244_vm2, %v5915_v19, -inf }
 0x43e   :  { %2654 = vmax.xlane.f32.xlu0 %v2653_v10 }
 0x440   :  { %2678 = vmax.xlane.f32.xlu1 %v2677_v26  ;;  %v1828_v26 = vcombine.low %v5354_v33, %v1673_v4 }
 0x442   :  { %2663 = vmax.xlane.f32.xlu0 %v2662_v1 }
 0x443   :  { %v2567_v27 = vpop.f32.mrb[12].mxu0  ;;  %v2614_v14 = vpop.f32.mrb[24].mxu1 }
 0x444   :  { %v4641_v56 = vpop.f32.mrb[25].mxu1  ;;  %v4635_v25 = vpop.f32.mrb[13].mxu0  ;;  %v5945_v38 = vsel %vm5859_vm3, %v2567_v27, -1e+09  ;;  %v5951_v40 = vsel %vm5859_vm3, %v2614_v14, -1e+09  ;;  %v1844_v14 = vcombine.low %v1661_v20, %v1685_v6 }
 0x445   :  { %v2570_v7 = vpop.f32.mrb[14].mxu0  ;;  %v2617_v37 = vpop.f32.mrb[26].mxu1  ;;  %v2680_v21 = vsel %vm2244_vm2, %v5945_v38, -inf  ;;  %v2686_v5 = vsel %vm2244_vm2, %v5951_v40, -inf  ;;  %v1829_v56 = vcombine.high %v5354_v33, %v1673_v4  ;;  %v1845_v25 = vcombine.high %v1661_v20, %v1685_v6 }
 0x446   :  { %v5939_v48 = vsel %vm5863_vm4, %v2570_v7, -1e+09  ;;  %v4642_v62 = vpop.f32.mrb[27].mxu1  ;;  %v4636_v50 = vpop.f32.mrb[15].mxu0  ;;  %2666 = vmax.xlane.f32.xlu0 %v2665_v39  ;;  %v5959_v52 = vsel %vm5863_vm4, %v2617_v37, -1e+09  ;;  %v1836_v7 = vrot.slane %v1828_v26, %v5388_v47  ;;  %v1852_v37 = vrot.slane %v1844_v14, %v5388_v47 }
 0x447   :  { %v2689_v0 = vsel %vm2244_vm2, %v5959_v52, -inf  ;;  %v2683_v43 = vsel %vm2244_vm2, %v5939_v48, -inf  ;;  %v1843_v39 = vrot.slane %v1829_v56, %v5388_v47  ;;  %v1859_v62 = vrot.slane %v1845_v25, %v5388_v47 }
 0x448   :  { %v1860_v50 = vcombine.low %v1836_v7, %v1852_v37  ;;  %v1861_v33 = vcombine.high %v1836_v7, %v1852_v37 }
 0x44a   :  { %2675 = vmax.xlane.f32.xlu0 %v2674_v51  ;;  %v1868_v6 = vrot.slane %v1860_v50, %v5397_v59 }
 0x44e   :  { %2681 = vmax.xlane.f32.xlu0 %v2680_v21 }
 0x451   :  { %1686 = vrot.lane.b32.xlu1 %v5374_v35, %s5043_s24 }
 0x452   :  { %2687 = vmax.xlane.f32.xlu0 %v2686_v5  ;;  %v1876_v5 = vcombine.low %v1843_v39, %v1859_v62 }
 0x456   :  { %2690 = vmax.xlane.f32.xlu0 %v2689_v0  ;;  %v1877_v0 = vcombine.high %v1843_v39, %v1859_v62 }
 0x475   :  { %2684 = vmax.xlane.f32.xlu1 %v2683_v43 }
 0x4a5   :  { %v2646_v53 = vpop.xlane.xlu0 %2645 }
 0x4a6   :  { %v2692_v32 = vsub.f32 %v5869_v63, %v2646_v53  ;;  %v1875_v53 = vrot.slane %v1861_v33, %v5397_v59 }
 0x4a7   :  { %v2649_v31 = vpop.xlane.xlu1 %2648 }
 0x4a8   :  { %v2708_v36 = vmul.f32 1.442695, %v2692_v32  ;;  %v2693_v58 = vsub.f32 %v5875_v3, %v2649_v31 }
 0x4a9   :  { %v2658_v22 = vpop.xlane.xlu0 %2657 }
 0x4aa   :  { %4804 = vpow2.f32 %v2708_v36  ;;  %v2710_v24 = vmul.f32 1.442695, %v2693_v58  ;;  %v2696_v9 = vsub.f32 %v5881_v34, %v2658_v22  ;;  %v1884_v36 = vrot.slane %v1876_v5, %v5397_v59 }
 0x4ab   :  { %v2661_v55 = vpop.xlane.xlu1 %2660  ;;  %v1891_v58 = vrot.slane %v1877_v0, %v5397_v59 }
 0x4ac   :  { %4806 = vpow2.f32 %v2710_v24  ;;  %v2716_v8 = vmul.f32 1.442695, %v2696_v9  ;;  %v2697_v11 = vsub.f32 %v5887_v60, %v2661_v55  ;;  %v2100_v9 = vcombine.low %v1868_v6, %v1875_v53 }
 0x4ad   :  { %v4411_v55 = vcombine.high %v1868_v6, %v1875_v53 }
 0x4ae   :  { %4808 = vpow2.f32 %v2716_v8  ;;  %v2718_v16 = vmul.f32 1.442695, %v2697_v11  ;;  %v1897_v8 = vcombine.high %v5374_v35, %v5967_v46 }
 0x4b0   :  { %4810 = vpow2.f32 %v2718_v16 }
 0x4b2   :  { %v2652_v2 = vpop.xlane.xlu0 %2651 }
 0x4b3   :  { %v2694_v63 = vsub.f32 %v5893_v28, %v2652_v2  ;;  %v4412_v2 = vcombine.high %v1884_v36, %v1891_v58 }
 0x4b4   :  { %v4805_v61 = vpop.eup %4804 }
 0x4b5   :  { %v2712_v30 = vmul.f32 1.442695, %v2694_v63  ;;  %v2740_v3 = vsel %vm2244_vm2, %v4805_v61, 0.0 }
 0x4b6   :  { %v4807_v54 = vpop.eup %4806  ;;  %2741 = vadd.xlane.f32.xlu0 %v2740_v3 }
 0x4b7   :  { %4812 = vpow2.f32 %v2712_v30  ;;  %v2743_v34 = vsel %vm2244_vm2, %v4807_v54, 0.0  ;;  %v2788_v15 = vpack.c.bf16 %v4807_v54, %v4805_v61  ;;  %v6011_v54 = vrot.slane %v2100_v9, %v5388_v47 }
 0x4b8   :  { %v4809_v17 = vpop.eup %4808  ;;  %2744 = vadd.xlane.f32.xlu1 %v2743_v34  ;;  %v6014_v34 = vrot.slane %v4411_v55, %v5388_v47 }
 0x4b9   :  { %4646 = vmatmul.mubr.msk.bf16.vlgmr.msra.gmra.mrb[16].mxu0 %vm2244_vm2, %v2788_v15  ;;  %v2752_v60 = vsel %vm2244_vm2, %v4809_v17, 0.0 }
 0x4ba   :  { %v4811_v10 = vpop.eup %4810  ;;  %4656 = vmatpush3.bf16.msra.mxu0 %v5852_v57  ;;  %2753 = vadd.xlane.f32.xlu0 %v2752_v60 }
 0x4bb   :  { %v2755_v28 = vsel %vm2244_vm2, %v4811_v10, 0.0  ;;  %4657 = vmatprep.mubr.msk.bf16.mxu0 %vm5045_vm1, %v5044_v29  ;;  %4667 = vmatprep.subr.bf16.mxu0 %v5044_v29  ;;  %v2790_v1 = vpack.c.bf16 %v4811_v10, %v4809_v17  ;;  %v6025_v10 = vrot.slane %v4412_v2, %v5388_v47 }
 0x4bc   :  { %2756 = vadd.xlane.f32.xlu1 %v2755_v28 }
 0x4c1   :  { %v5984_v27 = vpop.eup %4812  ;;  %4658 = vmatmul.mubr.msk.bf16.vlgmr.msra.gmra.mrb[20].mxu0 %vm2244_vm2, %v2790_v1 }
 0x4c2   :  { %v2746_v57 = vsel %vm2244_vm2, %v5984_v27, 0.0  ;;  %4669 = vmatprep.mubr.msk.bf16.mxu0 %vm5045_vm1, %v5044_v29 }
 0x4c3   :  { %2747 = vadd.xlane.f32.xlu0 %v2746_v57 }
 0x4c7   :  { %v2670_v51 = vpop.xlane.xlu0 %2669 }
 0x4c8   :  { %v2700_v21 = vsub.f32 %v5899_v41, %v2670_v51 }
 0x4c9   :  { %v2673_v43 = vpop.xlane.xlu1 %2672 }
 0x4ca   :  { %v2724_v4 = vmul.f32 1.442695, %v2700_v21  ;;  %v2701_v20 = vsub.f32 %v5909_v44, %v2673_v43  ;;  %v1896_v44 = vcombine.low %v5374_v35, %v5967_v46  ;;  %v1911_v46 = vrot.slane %v1897_v8, %v5388_v47 }
 0x4cb   :  { %v2655_v32 = vpop.xlane.xlu0 %2654  ;;  %v2133_v21 = vcombine.high %v6011_v54, %v6014_v34 }
 0x4cc   :  { %4814 = vpow2.f32 %v2724_v4  ;;  %v2695_v31 = vsub.f32 %v5905_v45, %v2655_v32  ;;  %v2726_v22 = vmul.f32 1.442695, %v2701_v20  ;;  %v2116_v45 = vcombine.low %v1884_v36, %v1891_v58 }
 0x4cd   :  { %v2679_v41 = vpop.xlane.xlu1 %2678  ;;  %v1904_v35 = vrot.slane %v1896_v44, %v5388_v47 }
 0x4ce   :  { %v2714_v24 = vmul.f32 1.442695, %v2695_v31  ;;  %v2703_v57 = vsub.f32 %v5915_v19, %v2679_v41 }
 0x4cf   :  { %v2664_v11 = vpop.xlane.xlu0 %2663 }
 0x4d0   :  { %4816 = vpow2.f32 %v2714_v24  ;;  %v2698_v16 = vsub.f32 %v5921_v12, %v2664_v11  ;;  %v2730_v53 = vmul.f32 1.442695, %v2703_v57 }
 0x4d1   :  { %4818 = vpow2.f32 %v2726_v22  ;;  %v1687_v63 = vpop.permute.xlu1 %1686 }
 0x4d2   :  { %v2720_v61 = vmul.f32 1.442695, %v2698_v16  ;;  %v1912_v30 = vcombine.low %v5965_v23, %v1687_v63  ;;  %v1913_v3 = vcombine.high %v5965_v23, %v1687_v63  ;;  %v6022_v23 = vrot.slane %v2116_v45, %v5388_v47 }
 0x4d3   :  { %v2667_v12 = vpop.xlane.xlu0 %2666 }
 0x4d4   :  { %4820 = vpow2.f32 %v2720_v61  ;;  %v1920_v15 = vrot.slane %v1912_v30, %v5388_v47  ;;  %v1927_v17 = vrot.slane %v1913_v3, %v5388_v47  ;;  %v2699_v60 = vsub.f32 %v5929_v49, %v2667_v12 }
 0x4d5   :  { %v2132_v49 = vcombine.low %v6011_v54, %v6014_v34  ;;  %v2148_v51 = vcombine.low %v6022_v23, %v6025_v10 }
 0x4d6   :  { %v6027_v28 = vpop.eup %4814  ;;  %v1928_v26 = vcombine.low %v1904_v35, %v1920_v15  ;;  %v1929_v1 = vcombine.high %v1904_v35, %v1920_v15  ;;  %v1944_v14 = vcombine.low %v1911_v46, %v1927_v17  ;;  %v1945_v56 = vcombine.high %v1911_v46, %v1927_v17 }
 0x4d7   :  { %v2722_v25 = vmul.f32 1.442695, %v2699_v60  ;;  %v2676_v7 = vpop.xlane.xlu0 %2675  ;;  %v2764_v37 = vsel %vm2244_vm2, %v6027_v28, 0.0  ;;  %v2140_v55 = vrot.slane %v2132_v49, %v5397_v59  ;;  %v2156_v44 = vrot.slane %v2148_v51, %v5397_v59 }
 0x4d8   :  { %v1936_v39 = vrot.slane %v1928_v26, %v5397_v59  ;;  %v1943_v62 = vrot.slane %v1929_v1, %v5397_v59  ;;  %v1952_v50 = vrot.slane %v1944_v14, %v5397_v59  ;;  %v1959_v33 = vrot.slane %v1945_v56, %v5397_v59  ;;  %2765 = vadd.xlane.f32.xlu0 %v2764_v37 }
 0x4d9   :  { %4822 = vpow2.f32 %v2722_v25  ;;  %v2702_v19 = vsub.f32 %v5935_v13, %v2676_v7  ;;  %v2147_v15 = vrot.slane %v2133_v21, %v5397_v59 }
 0x4da   :  { %v4817_v5 = vpop.eup %4816  ;;  %v2168_v0 = vcombine.low %v1936_v39, %v1943_v62  ;;  %v4413_v43 = vcombine.high %v1936_v39, %v1943_v62  ;;  %v2184_v4 = vcombine.low %v1952_v50, %v1959_v33  ;;  %v4414_v20 = vcombine.high %v1952_v50, %v1959_v33 }
 0x4db   :  { %v6043_v6 = vpop.eup %4818  ;;  %v2728_v32 = vmul.f32 1.442695, %v2702_v19  ;;  %v2682_v31 = vpop.xlane.xlu0 %2681  ;;  %v2749_v36 = vsel %vm2244_vm2, %v4817_v5, 0.0  ;;  %v2789_v13 = vpack.c.bf16 %v4817_v5, %v5984_v27  ;;  %v2149_v27 = vcombine.high %v6022_v23, %v6025_v10 }
 0x4dc   :  { %v2175_v58 = vrot.slane %v2168_v0, %v5388_v47  ;;  %v2183_v22 = vrot.slane %v4413_v43, %v5388_v47  ;;  %v2191_v41 = vrot.slane %v2184_v4, %v5388_v47  ;;  %v2199_v24 = vrot.slane %v4414_v20, %v5388_v47  ;;  %2750 = vadd.xlane.f32.xlu1 %v2749_v36 }
 0x4dd   :  { %v2704_v9 = vsub.f32 %v5945_v38, %v2682_v31  ;;  %4652 = vmatmul.mubr.msk.bf16.vlgmr.msra.gmra.mrb[28].mxu1 %vm2244_vm2, %v2789_v13  ;;  %v2767_v11 = vsel %vm2244_vm2, %v6043_v6, 0.0  ;;  %4824 = vpow2.f32 %v2728_v32  ;;  %v2164_v10 = vcombine.low %v2140_v55, %v2156_v44 }
 0x4de   :  { %v4821_v8 = vpop.eup %4820  ;;  %4662 = vmatpush3.bf16.msra.mxu1 %v5854_v18  ;;  %4663 = vmatprep.mubr.msk.bf16.mxu1 %vm5045_vm1, %v5044_v29  ;;  %v2200_v16 = vcombine.low %v2175_v58, %v2183_v22  ;;  %v2216_v38 = vcombine.low %v2191_v41, %v2199_v24  ;;  %v2201_v45 = vcombine.high %v2175_v58, %v2183_v22  ;;  %4826 = vpow2.f32 %v2730_v53 }
 0x4df   :  { %v2732_v2 = vmul.f32 1.442695, %v2704_v9  ;;  %v2688_v63 = vpop.xlane.xlu0 %2687  ;;  %v2758_v61 = vsel %vm2244_vm2, %v4821_v8, 0.0  ;;  %4673 = vmatprep.subr.bf16.mxu1 %v5044_v29  ;;  %v2217_v30 = vcombine.high %v2191_v41, %v2199_v24  ;;  %v2163_v26 = vrot.slane %v2149_v27, %v5397_v59 }
 0x4e0   :  { %v2706_v18 = vsub.f32 %v5951_v40, %v2688_v63  ;;  %2768 = vadd.xlane.f32.xlu1 %v2767_v11  ;;  %2759 = vadd.xlane.f32.xlu0 %v2758_v61  ;;  %v2208_v3 = vrot.slane %v2200_v16, %v5397_v59  ;;  %v2224_v54 = vrot.slane %v2216_v38, %v5397_v59 }
 0x4e1   :  { %4828 = vpow2.f32 %v2732_v2  ;;  %v2215_v34 = vrot.slane %v2201_v45, %v5397_v59  ;;  %v2231_v35 = vrot.slane %v2217_v30, %v5397_v59  ;;  %v2165_v40 = vcombine.high %v2140_v55, %v2156_v44 }
 0x4e2   :  { %v2232_v46 = vcombine.low %v2208_v3, %v2224_v54  ;;  %v2233_v12 = vcombine.high %v2208_v3, %v2224_v54  ;;  %v2736_v60 = vmul.f32 1.442695, %v2706_v18  ;;  %v2166_v49 = vcombine.low %v2147_v15, %v2163_v26 }
 0x4e3   :  { %v4823_v17 = vpop.eup %4822  ;;  %v2691_v23 = vpop.xlane.xlu0 %2690  ;;  %v2234_v7 = vcombine.low %v2215_v34, %v2231_v35  ;;  %v2792_v39 = vpack.c.bf16 %v6043_v6, %v6027_v28  ;;  %v2235_v50 = vcombine.high %v2215_v34, %v2231_v35  ;;  %v2167_v51 = vcombine.high %v2147_v15, %v2163_v26 }
 0x4e4   :  { %v2707_v1 = vsub.f32 %v5959_v52, %v2691_v23  ;;  %v2761_v14 = vsel %vm2244_vm2, %v4823_v17, 0.0  ;;  %v2791_v56 = vpack.c.bf16 %v4823_v17, %v4821_v8  ;;  %v2240_v57 = vpack.c.bf16 %v2232_v46, %v2164_v10 }
 0x4e5   :  { %2762 = vadd.xlane.f32.xlu1 %v2761_v14  ;;  %v2241_v25 = vpack.c.bf16 %v2233_v12, %v2165_v40  ;;  %4830 = vpow2.f32 %v2736_v60  ;;  %v2242_v62 = vpack.c.bf16 %v2234_v7, %v2166_v49  ;;  %v2243_v5 = vpack.c.bf16 %v2235_v50, %v2167_v51 }
 0x4e6   :  { %v2738_v37 = vmul.f32 1.442695, %v2707_v1  ;;  %4664 = vmatmul.mubr.msk.bf16.vlgmr.msra.gmra.mrb[32].mxu1 %vm2244_vm2, %v2791_v56  ;;  %4668 = vmatpush3.bf16.msra.mxu0 %v2240_v57 }
 0x4e7   :  { %4674 = vmatpush3.bf16.msra.mxu1 %v2241_v25  ;;  %4679 = vmatprep.subr.bf16.mxu0 %v5044_v29  ;;  %v4825_v52 = vpop.eup %4824 }
 0x4e8   :  { %4832 = vpow2.f32 %v2738_v37  ;;  %4675 = vmatprep.mubr.msk.bf16.mxu1 %vm5045_vm1, %v5044_v29  ;;  %4685 = vmatprep.subr.bf16.mxu1 %v5044_v29  ;;  %v4827_v33 = vpop.eup %4826  ;;  %v2770_v0 = vsel %vm2244_vm2, %v4825_v52, 0.0 }
 0x4e9   :  { %4670 = vmatmul.mubr.msk.bf16.vlgmr.msra.gmra.mrb[24].mxu0 %vm2244_vm2, %v2792_v39  ;;  %v2793_v21 = vpack.c.bf16 %v4827_v33, %v4825_v52  ;;  %v2773_v58 = vsel %vm2244_vm2, %v4827_v33, 0.0 }
 0x4ea   :  { %4680 = vmatpush3.bf16.msra.mxu0 %v2242_v62  ;;  %4681 = vmatprep.mubr.msk.bf16.mxu0 %vm5045_vm1, %v5044_v29 }
 0x4eb   :  { %v4829_v19 = vpop.eup %4828 }
 0x4ec   :  { %v2776_v28 = vsel %vm2244_vm2, %v4829_v19, 0.0 }
 0x4ed   :  { %2777 = vadd.xlane.f32.xlu0 %v2776_v28 }
 0x4ee   :  { %4676 = vmatmul.mubr.msk.bf16.vlgmr.msra.gmra.mrb[36].mxu1 %vm2244_vm2, %v2793_v21 }
 0x4ef   :  { %4686 = vmatpush3.bf16.msra.mxu1 %v2243_v5  ;;  %4687 = vmatprep.mubr.msk.bf16.mxu1 %vm5045_vm1, %v5044_v29  ;;  %v4831_v43 = vpop.eup %4830 }
 0x4f0   :  { %v2782_v6 = vsel %vm2244_vm2, %v4831_v43, 0.0 }
 0x4f1   :  { %2771 = vadd.xlane.f32.xlu0 %v2770_v0 }
 0x4f2   :  { %v4833_v4 = vpop.eup %4832 }
 0x4f3   :  { %v2795_v20 = vpack.c.bf16 %v4833_v4, %v4831_v43  ;;  %v2785_v22 = vsel %vm2244_vm2, %v4833_v4, 0.0 }
 0x4f5   :  { %2783 = vadd.xlane.f32.xlu0 %v2782_v6 }
 0x4f6   :  { %4688 = vmatmul.mubr.msk.bf16.vlgmr.msra.gmra.mrb[40].mxu1 %vm2244_vm2, %v2795_v20 }
 0x502   :  { %v2685_v53 = vpop.xlane.xlu1 %2684 }
 0x503   :  { %v2705_v32 = vsub.f32 %v5939_v48, %v2685_v53 }
 0x505   :  { %v2734_v31 = vmul.f32 1.442695, %v2705_v32 }
 0x507   :  { %4834 = vpow2.f32 %v2734_v31 }
 0x511   :  { %v4835_v36 = vpop.eup %4834 }
 0x512   :  { %v2779_v13 = vsel %vm2244_vm2, %v4835_v36, 0.0  ;;  %v2794_v29 = vpack.c.bf16 %v4835_v36, %v4829_v19 }
 0x513   :  { %2780 = vadd.xlane.f32.xlu1 %v2779_v13 }
 0x514   :  { %4682 = vmatmul.mubr.msk.bf16.vlgmr.msra.gmra.mrb[28].mxu0 %vm2244_vm2, %v2794_v29 }
 0x517   :  { %2774 = vadd.xlane.f32.xlu1 %v2773_v58 }
 0x51b   :  { %2786 = vadd.xlane.f32.xlu1 %v2785_v22 }
 0x543   :  { %v2742_v41 = vpop.xlane.xlu0 %2741 }
 0x544   :  { %4836 = vrcp.f32 %v2742_v41 }
 0x545   :  { %v2745_v24 = vpop.xlane.xlu1 %2744 }
 0x547   :  { %v2754_v9 = vpop.xlane.xlu0 %2753 }
 0x548   :  { %4838 = vrcp.f32 %v2754_v9 }
 0x549   :  { %v2757_v48 = vpop.xlane.xlu1 %2756  ;;  %4840 = vrcp.f32 %v2745_v24 }
 0x54a   :  { %4842 = vrcp.f32 %v2757_v48 }
 0x54e   :  { %v4837_v11 = vpop.eup %4836 }
 0x550   :  { %v2748_v60 = vpop.xlane.xlu0 %2747 }
 0x551   :  { %4844 = vrcp.f32 %v2748_v60 }
 0x552   :  { %v4839_v16 = vpop.eup %4838 }
 0x553   :  { %v4841_v45 = vpop.eup %4840 }
 0x554   :  { %v4843_v30 = vpop.eup %4842 }
 0x55b   :  { %v4845_v49 = vpop.eup %4844 }
 0x565   :  { %v6095_v23 = vpop.xlane.xlu0 %2765 }
 0x569   :  { %v2751_v17 = vpop.xlane.xlu1 %2750 }
 0x56d   :  { %v6097_v10 = vpop.xlane.xlu1 %2768  ;;  %v2760_v40 = vpop.xlane.xlu0 %2759 }
 0x56e   :  { %4846 = vrcp.f32 %v2760_v40 }
 0x56f   :  { %4848 = vrcp.f32 %v2751_v17 }
 0x572   :  { %v2763_v26 = vpop.xlane.xlu1 %2762 }
 0x573   :  { %4850 = vrcp.f32 %v2763_v26 }
 0x578   :  { %v4847_v52 = vpop.eup %4846 }
 0x579   :  { %v4849_v50 = vpop.eup %4848 }
 0x57a   :  { %v6099_v1 = vpop.xlane.xlu0 %2777 }
 0x57d   :  { %v4851_v28 = vpop.eup %4850 }
 0x57e   :  { %v2772_v37 = vpop.xlane.xlu0 %2771 }
 0x57f   :  { %4852 = vrcp.f32 %v2772_v37 }
 0x582   :  { %v2784_v5 = vpop.xlane.xlu0 %2783 }
 0x58c   :  { %v2833_v55 = vpop.f32.mrb[16].mxu0 }
 0x58d   :  { %v4647_v44 = vpop.f32.mrb[17].mxu0  ;;  %v3164_v2 = vmul.f32 %v4837_v11, %v2833_v55 }
 0x58e   :  { %v2836_v27 = vpop.f32.mrb[18].mxu0 }
 0x58f   :  { %v4648_v8 = vpop.f32.mrb[19].mxu0  ;;  %v3165_v3 = vmul.f32 %v4841_v45, %v2836_v27 }
 0x594   :  { %v2921_v38 = vpop.f32.mrb[20].mxu0 }
 0x595   :  { %v3168_v63 = vmul.f32 %v4839_v16, %v2921_v38  ;;  %v4659_v61 = vpop.f32.mrb[21].mxu0 }
 0x596   :  { %v2924_v18 = vpop.f32.mrb[22].mxu0 }
 0x597   :  { %v3180_v54 = vcombine.low %v3164_v2, %v3168_v63  ;;  %v3181_v34 = vcombine.high %v3164_v2, %v3168_v63  ;;  %v3169_v35 = vmul.f32 %v4843_v30, %v2924_v18  ;;  %v4660_v46 = vpop.f32.mrb[23].mxu0 }
 0x599   :  { %v3248_v12 = vcombine.low %v3165_v3, %v3169_v35  ;;  %v3249_v15 = vcombine.high %v3165_v3, %v3169_v35  ;;  %v3188_v53 = vrot.slane %v3180_v54, %v5388_v47  ;;  %v3195_v32 = vrot.slane %v3181_v34, %v5388_v47 }
 0x59b   :  { %v3256_v24 = vrot.slane %v3248_v12, %v5388_v47  ;;  %v3263_v11 = vrot.slane %v3249_v15, %v5388_v47  ;;  %v4853_v12 = vpop.eup %4852 }
 0x5a0   :  { %v6101_v57 = vpop.xlane.xlu1 %2780 }
 0x5a4   :  { %v2775_v39 = vpop.xlane.xlu1 %2774 }
 0x5a5   :  { %4854 = vrcp.f32 %v2775_v39 }
 0x5a6   :  { %4856 = vrcp.f32 %v2784_v5 }
 0x5a8   :  { %v2787_v36 = vpop.xlane.xlu1 %2786 }
 0x5a9   :  { %4858 = vrcp.f32 %v2787_v36 }
 0x5aa   :  { %4860 = vrcp.f32 %v6095_v23 }
 0x5ab   :  { %4862 = vrcp.f32 %v6099_v1 }
 0x5ac   :  { %4864 = vrcp.f32 %v6097_v10 }
 0x5ad   :  { %4866 = vrcp.f32 %v6101_v57 }
 0x5b0   :  { %v2877_v14 = vpop.f32.mrb[28].mxu1 }
 0x5b1   :  { %v4653_v56 = vpop.f32.mrb[29].mxu1  ;;  %v3166_v33 = vmul.f32 %v4845_v49, %v2877_v14  ;;  %v4855_v14 = vpop.eup %4854 }
 0x5b2   :  { %v2880_v25 = vpop.f32.mrb[30].mxu1 }
 0x5b3   :  { %v4654_v7 = vpop.f32.mrb[31].mxu1  ;;  %v3167_v0 = vmul.f32 %v4849_v50, %v2880_v25 }
 0x5b9   :  { %v2965_v62 = vpop.f32.mrb[32].mxu1 }
 0x5ba   :  { %v3170_v19 = vmul.f32 %v4847_v52, %v2965_v62  ;;  %v4665_v51 = vpop.f32.mrb[33].mxu1 }
 0x5bb   :  { %v2968_v21 = vpop.f32.mrb[34].mxu1 }
 0x5bc   :  { %v3196_v43 = vcombine.low %v3166_v33, %v3170_v19  ;;  %v3197_v4 = vcombine.high %v3166_v33, %v3170_v19  ;;  %v3171_v20 = vmul.f32 %v4851_v28, %v2968_v21  ;;  %v4666_v6 = vpop.f32.mrb[35].mxu1  ;;  %v6105_v31 = vpop.f32.mrb[24].mxu0 }
 0x5bd   :  { %v4671_v41 = vpop.f32.mrb[25].mxu0 }
 0x5be   :  { %v3204_v13 = vrot.slane %v3196_v43, %v5388_v47  ;;  %v3211_v29 = vrot.slane %v3197_v4, %v5388_v47  ;;  %v3264_v58 = vcombine.low %v3167_v0, %v3171_v20  ;;  %v3265_v22 = vcombine.high %v3167_v0, %v3171_v20  ;;  %v6110_v9 = vpop.f32.mrb[26].mxu0  ;;  %v4857_v43 = vpop.eup %4856 }
 0x5bf   :  { %v4672_v8 = vpop.f32.mrb[27].mxu0  ;;  %v4859_v41 = vpop.eup %4858 }
 0x5c0   :  { %v3212_v48 = vcombine.low %v3188_v53, %v3204_v13  ;;  %v3213_v55 = vcombine.high %v3188_v53, %v3204_v13  ;;  %v3228_v44 = vcombine.low %v3195_v32, %v3211_v29  ;;  %v3229_v27 = vcombine.high %v3195_v32, %v3211_v29 }
 0x5c1   :  { %v3272_v16 = vrot.slane %v3264_v58, %v5388_v47  ;;  %v3279_v38 = vrot.slane %v3265_v22, %v5388_v47  ;;  %v3053_v45 = vpop.f32.mrb[36].mxu1 }
 0x5c2   :  { %v3220_v2 = vrot.slane %v3212_v48, %v5397_v59  ;;  %v3227_v63 = vrot.slane %v3213_v55, %v5397_v59  ;;  %v3236_v61 = vrot.slane %v3228_v44, %v5397_v59  ;;  %v3243_v30 = vrot.slane %v3229_v27, %v5397_v59  ;;  %v4677_v18 = vpop.f32.mrb[37].mxu1 }
 0x5c3   :  { %v3280_v3 = vcombine.low %v3256_v24, %v3272_v16  ;;  %v3281_v54 = vcombine.high %v3256_v24, %v3272_v16  ;;  %v3296_v34 = vcombine.low %v3263_v11, %v3279_v38  ;;  %v3297_v35 = vcombine.high %v3263_v11, %v3279_v38  ;;  %v3056_v46 = vpop.f32.mrb[38].mxu1 }
 0x5c4   :  { %v3452_v15 = vcombine.low %v3220_v2, %v3227_v63  ;;  %v4431_v17 = vcombine.high %v3220_v2, %v3227_v63  ;;  %v3468_v60 = vcombine.low %v3236_v61, %v3243_v30  ;;  %v4432_v40 = vcombine.high %v3236_v61, %v3243_v30  ;;  %v4678_v26 = vpop.f32.mrb[39].mxu1 }
 0x5c5   :  { %v3288_v56 = vrot.slane %v3280_v3, %v5397_v59  ;;  %v3295_v25 = vrot.slane %v3281_v54, %v5397_v59  ;;  %v3304_v7 = vrot.slane %v3296_v34, %v5397_v59  ;;  %v3311_v37 = vrot.slane %v3297_v35, %v5397_v59 }
 0x5c6   :  { %v6123_v49 = vmul.f32 %v4853_v12, %v3053_v45  ;;  %v6125_v39 = vmul.f32 %v4855_v14, %v3056_v46  ;;  %v3459_v52 = vrot.slane %v3452_v15, %v5388_v47  ;;  %v3467_v62 = vrot.slane %v4431_v17, %v5388_v47 }
 0x5c7   :  { %v3520_v50 = vcombine.low %v3288_v56, %v3295_v25  ;;  %v4433_v33 = vcombine.high %v3288_v56, %v3295_v25  ;;  %v3536_v19 = vcombine.low %v3304_v7, %v3311_v37  ;;  %v4434_v51 = vcombine.high %v3304_v7, %v3311_v37  ;;  %v4764_v25 = vld [vmem:[%s6445_s9] sm:$0xff]   ;;  %v4861_v37 = vpop.eup %4860 }
 0x5c8   :  { %v3475_v28 = vrot.slane %v3468_v60, %v5388_v47  ;;  %v3483_v21 = vrot.slane %v4432_v40, %v5388_v47  ;;  %v3485_v5 = vcombine.high %v3459_v52, %v3467_v62  ;;  %v3484_v0 = vcombine.low %v3459_v52, %v3467_v62  ;;  %4691 = vmatprep.subr.bf16.mxu0 %v4764_v25 }
 0x5c9   :  { %v3141_v4 = vpop.f32.mrb[40].mxu1  ;;  %v3527_v20 = vrot.slane %v3520_v50, %v5388_v47  ;;  %v3535_v6 = vrot.slane %v4433_v33, %v5388_v47  ;;  %v3543_v53 = vrot.slane %v3536_v19, %v5388_v47  ;;  %v3551_v32 = vrot.slane %v4434_v51, %v5388_v47  ;;  %4692 = vmatpush3.bf16.msra.mxu0 %v4764_v25 }
 0x5ca   :  { %v6135_v36 = vmul.f32 %v4857_v43, %v3141_v4  ;;  %v4689_v13 = vpop.f32.mrb[41].mxu1  ;;  %v3499_v29 = vrot.slane %v3485_v5, %v5397_v59  ;;  %v3501_v58 = vcombine.high %v3475_v28, %v3483_v21  ;;  %v6139_v22 = vrot.slane %v3484_v0, %v5397_v59 }
 0x5cb   :  { %v3144_v24 = vpop.f32.mrb[42].mxu1  ;;  %v3553_v48 = vcombine.high %v3527_v20, %v3535_v6  ;;  %v3569_v55 = vcombine.high %v3543_v53, %v3551_v32  ;;  %v3500_v44 = vcombine.low %v3475_v28, %v3483_v21  ;;  %v3552_v27 = vcombine.low %v3527_v20, %v3535_v6 }
 0x5cc   :  { %v3332_v8 = vcombine.low %v6123_v49, %v6135_v36  ;;  %v3333_v11 = vcombine.high %v6123_v49, %v6135_v36  ;;  %v3179_v16 = vmul.f32 %v4859_v41, %v3144_v24  ;;  %v4690_v38 = vpop.f32.mrb[43].mxu1  ;;  %v3515_v45 = vrot.slane %v3501_v58, %v5397_v59  ;;  %v4863_v49 = vpop.eup %4862 }
 0x5cd   :  { %v3567_v2 = vrot.slane %v3553_v48, %v5397_v59  ;;  %v3583_v63 = vrot.slane %v3569_v55, %v5397_v59  ;;  %v6149_v61 = vrot.slane %v3500_v44, %v5397_v59  ;;  %v6154_v3 = vrot.slane %v3552_v27, %v5397_v59  ;;  %v4865_v52 = vpop.eup %4864 }
 0x5ce   :  { %v3400_v30 = vcombine.low %v6125_v39, %v3179_v16  ;;  %v3401_v18 = vcombine.high %v6125_v39, %v3179_v16  ;;  %v3518_v54 = vcombine.low %v3499_v29, %v3515_v45  ;;  %v3568_v46 = vcombine.low %v3543_v53, %v3551_v32  ;;  %v4867_v19 = vpop.eup %4866 }
 0x5cf   :  { %v3586_v34 = vcombine.low %v3567_v2, %v3583_v63  ;;  %v3517_v35 = vcombine.high %v6139_v22, %v6149_v61  ;;  %v3516_v12 = vcombine.low %v6139_v22, %v6149_v61  ;;  %v3519_v15 = vcombine.high %v3499_v29, %v3515_v45 }
 0x5d0   :  { %v6161_v60 = vrot.slane %v3568_v46, %v5397_v59  ;;  %v3587_v40 = vcombine.high %v3567_v2, %v3583_v63  ;;  %v3172_v62 = vmul.f32 %v4861_v37, %v6105_v31  ;;  %v3173_v28 = vmul.f32 %v4865_v52, %v6110_v9 }
 0x5d1   :  { %v4727_v17 = vpack.i.bf16 %v3586_v34, %v3518_v54  ;;  %v3340_v10 = vrot.slane %v3332_v8, %v5388_v47  ;;  %v3347_v57 = vrot.slane %v3333_v11, %v5388_v47  ;;  %v3408_v9 = vrot.slane %v3400_v30, %v5388_v47 }
 0x5d2   :  { %v3584_v26 = vcombine.low %v6154_v3, %v6161_v60  ;;  %v3585_v14 = vcombine.high %v6154_v3, %v6161_v60  ;;  %v4732_v56 = vpack.i.bf16 %v3587_v40, %v3519_v15  ;;  %v3415_v36 = vrot.slane %v3401_v18, %v5388_v47 }
 0x5d3   :  { %4728 = vrot.lane.b32.xlu1 %v4727_v17, %s5048_s26 }
 0x5d4   :  { %v4722_v7 = vpack.i.bf16 %v3585_v14, %v3517_v35 }
 0x5d6   :  { %4723 = vrot.lane.b32.xlu0 %v4722_v7, %s5049_s29 }
 0x5da   :  { %4733 = vrot.lane.b32.xlu0 %v4732_v56, %s5050_s0 }
 0x5e7   :  { %v3097_v39 = vpop.f32.mrb[28].mxu0 }
 0x5e8   :  { %v3176_v50 = vmul.f32 %v4863_v49, %v3097_v39  ;;  %v4683_v33 = vpop.f32.mrb[29].mxu0  ;;  %v4765_v49 = vld [vmem:[%s6445_s9 + $0x8] sm:$0xff]  }
 0x5e9   :  { %v3100_v51 = vpop.f32.mrb[30].mxu0  ;;  %4693 = vmatprep.subr.bf16.mxu0 %v4765_v49 }
 0x5ea   :  { %v3316_v21 = vcombine.low %v3172_v62, %v3176_v50  ;;  %v3317_v23 = vcombine.high %v3172_v62, %v3176_v50  ;;  %v3177_v5 = vmul.f32 %v4867_v19, %v3100_v51  ;;  %v4684_v1 = vpop.f32.mrb[31].mxu0  ;;  %4694 = vmatpush3.bf16.msra.mxu0 %v4765_v49 }
 0x5ec   :  { %v3324_v0 = vrot.slane %v3316_v21, %v5388_v47  ;;  %v3331_v43 = vrot.slane %v3317_v23, %v5388_v47  ;;  %v3384_v4 = vcombine.low %v3173_v28, %v3177_v5  ;;  %v3385_v31 = vcombine.high %v3173_v28, %v3177_v5 }
 0x5ee   :  { %v3348_v20 = vcombine.low %v3324_v0, %v3340_v10  ;;  %v3349_v6 = vcombine.high %v3324_v0, %v3340_v10  ;;  %v3364_v53 = vcombine.low %v3331_v43, %v3347_v57  ;;  %v3365_v32 = vcombine.high %v3331_v43, %v3347_v57  ;;  %v4766_v43 = vld [vmem:[%s6445_s9 + $0x10] sm:$0xff]  }
 0x5ef   :  { %v3392_v13 = vrot.slane %v3384_v4, %v5388_v47  ;;  %v3399_v29 = vrot.slane %v3385_v31, %v5388_v47  ;;  %4695 = vmatprep.subr.bf16.mxu0 %v4766_v43 }
 0x5f0   :  { %v3356_v58 = vrot.slane %v3348_v20, %v5397_v59  ;;  %v3363_v41 = vrot.slane %v3349_v6, %v5397_v59  ;;  %v3372_v24 = vrot.slane %v3364_v53, %v5397_v59  ;;  %v3379_v48 = vrot.slane %v3365_v32, %v5397_v59  ;;  %4696 = vmatpush3.bf16.msra.mxu0 %v4766_v43 }
 0x5f1   :  { %v3416_v55 = vcombine.low %v3392_v13, %v3408_v9  ;;  %v3417_v44 = vcombine.high %v3392_v13, %v3408_v9  ;;  %v3432_v27 = vcombine.low %v3399_v29, %v3415_v36  ;;  %v3433_v8 = vcombine.high %v3399_v29, %v3415_v36 }
 0x5f2   :  { %v3588_v11 = vcombine.low %v3356_v58, %v3363_v41  ;;  %v4435_v16 = vcombine.high %v3356_v58, %v3363_v41  ;;  %v3604_v38 = vcombine.low %v3372_v24, %v3379_v48  ;;  %v4436_v45 = vcombine.high %v3372_v24, %v3379_v48  ;;  %v4767_v41 = vld [vmem:[%s6445_s9 + $0x18] sm:$0xff]  }
 0x5f3   :  { %v3424_v2 = vrot.slane %v3416_v55, %v5397_v59  ;;  %v3431_v63 = vrot.slane %v3417_v44, %v5397_v59  ;;  %v3440_v30 = vrot.slane %v3432_v27, %v5397_v59  ;;  %v3447_v18 = vrot.slane %v3433_v8, %v5397_v59  ;;  %4697 = vmatprep.subr.bf16.mxu0 %v4767_v41 }
 0x5f4   :  { %v3595_v54 = vrot.slane %v3588_v11, %v5388_v47  ;;  %v3603_v34 = vrot.slane %v4435_v16, %v5388_v47  ;;  %v3611_v35 = vrot.slane %v3604_v38, %v5388_v47  ;;  %v3619_v46 = vrot.slane %v4436_v45, %v5388_v47  ;;  %4698 = vmatpush3.bf16.msra.mxu0 %v4767_v41 }
 0x5f5   :  { %v3656_v15 = vcombine.low %v3424_v2, %v3431_v63  ;;  %v4437_v17 = vcombine.high %v3424_v2, %v3431_v63  ;;  %v3672_v40 = vcombine.low %v3440_v30, %v3447_v18  ;;  %v4438_v14 = vcombine.high %v3440_v30, %v3447_v18 }
 0x5f6   :  { %v3620_v56 = vcombine.low %v3595_v54, %v3603_v34  ;;  %v3636_v25 = vcombine.low %v3611_v35, %v3619_v46  ;;  %v3621_v7 = vcombine.high %v3595_v54, %v3603_v34  ;;  %v3637_v37 = vcombine.high %v3611_v35, %v3619_v46 }
 0x5f7   :  { %v3663_v39 = vrot.slane %v3656_v15, %v5388_v47  ;;  %v3671_v52 = vrot.slane %v4437_v17, %v5388_v47  ;;  %v3679_v62 = vrot.slane %v3672_v40, %v5388_v47  ;;  %v3687_v50 = vrot.slane %v4438_v14, %v5388_v47 }
 0x5f8   :  { %v6207_v33 = vrot.slane %v3620_v56, %v5397_v59  ;;  %v3644_v19 = vrot.slane %v3636_v25, %v5397_v59  ;;  %v3635_v51 = vrot.slane %v3621_v7, %v5397_v59  ;;  %v3651_v28 = vrot.slane %v3637_v37, %v5397_v59  ;;  %v4439_v37 = vld [vmem:[%s6446_s10] ss:$0 sm:$0xff] }
 0x5f9   :  { %v3688_v21 = vcombine.low %v3663_v39, %v3671_v52  ;;  %v3704_v23 = vcombine.low %v3679_v62, %v3687_v50  ;;  %v3689_v5 = vcombine.high %v3663_v39, %v3671_v52  ;;  %v3705_v1 = vcombine.high %v3679_v62, %v3687_v50 }
 0x5fa   :  { %v3653_v10 = vcombine.high %v6207_v33, %v3644_v19  ;;  %v3652_v57 = vcombine.low %v6207_v33, %v3644_v19  ;;  %v3654_v47 = vcombine.low %v3635_v51, %v3651_v28  ;;  %v3655_v0 = vcombine.high %v3635_v51, %v3651_v28  ;;  %v4892_v19 = vld [vmem:[%s6459_s18] sm:$0xff] }
 0x5fb   :  { %v3696_v4 = vrot.slane %v3688_v21, %v5397_v59  ;;  %v3712_v31 = vrot.slane %v3704_v23, %v5397_v59  ;;  %v3703_v20 = vrot.slane %v3689_v5, %v5397_v59  ;;  %v3719_v6 = vrot.slane %v3705_v1, %v5397_v59  ;;  %v4893_v21 = vld [vmem:[%s6459_s18 + $0x10] sm:$0xff]  ;;  %v4894_v1 = vld [vmem:[%s6459_s18 + $0x8] sm:$0xff] }
 0x5fd   :  { %v3720_v53 = vcombine.low %v3696_v4, %v3712_v31  ;;  %v3721_v32 = vcombine.high %v3696_v4, %v3712_v31  ;;  %v3722_v9 = vcombine.low %v3703_v20, %v3719_v6  ;;  %v3723_v36 = vcombine.high %v3703_v20, %v3719_v6 }
 0x5ff   :  { %v4737_v13 = vpack.i.bf16 %v3721_v32, %v3653_v10  ;;  %v4742_v29 = vpack.i.bf16 %v3722_v9, %v3654_v47  ;;  %v4747_v58 = vpack.i.bf16 %v3723_v36, %v3655_v0  ;;  %v4895_v0 = vld [vmem:[%s6459_s18 + $0x18] sm:$0xff] }
 0x601   :  { %4738 = vrot.lane.b32.xlu1 %v4737_v13, %s5049_s29 }
 0x605   :  { %4743 = vrot.lane.b32.xlu1 %v4742_v29, %s5048_s26 }
 0x609   :  { %4748 = vrot.lane.b32.xlu1 %v4747_v58, %s5050_s0 }
 0x645   :  { %v4729_v59 = vpop.permute.xlu1 %4728 }
 0x646   :  { %v4731_v44 = vunpack.i.h.bf16 %v4729_v59  ;;  %v4730_v27 = vunpack.i.l.bf16 %v4729_v59 }
 0x648   :  { %v4724_v24 = vpop.permute.xlu0 %4723 }
 0x649   :  { %v4726_v48 = vunpack.i.h.bf16 %v4724_v24  ;;  %v4725_v55 = vunpack.i.l.bf16 %v4724_v24 }
 0x64b   :  { %v3773_v8 = vsel %vm2244_vm2, %v3584_v26, %v4726_v48  ;;  %v3772_v11 = vsel %vm2244_vm2, %v3516_v12, %v4725_v55 }
 0x64c   :  { %v4734_v16 = vpop.permute.xlu0 %4733  ;;  %v3777_v2 = vsel %vm3776_vm5, %v3772_v11, %v4730_v27  ;;  %v3778_v63 = vsel %vm3776_vm5, %v3773_v8, %v4731_v44 }
 0x64d   :  { %v4736_v38 = vunpack.i.h.bf16 %v4734_v16  ;;  %v4735_v45 = vunpack.i.l.bf16 %v4734_v16 }
 0x64f   :  { %v3782_v30 = vsel %vm3781_vm6, %v3777_v2, %v4735_v45  ;;  %v3783_v3 = vsel %vm3781_vm6, %v3778_v63, %v4736_v38  ;;  %v4768_v45 = vld [vmem:[%s6449_s13] ss:$8 sps:$4 sm:$0xff]   ;;  %v4770_v2 = vld [vmem:[%s6449_s13 + $0x4] ss:$8 sps:$4 sm:$0xff]   ;;  %v4773_v63 = vld [vmem:[%s6449_s13 + $0x14] ss:$8 sps:$4 sm:$0xff]  }
 0x650   :  { %v3786_v60 = vpack.c.bf16 %v3783_v3, %v3782_v30  ;;  %4028 = vmatprep.subr.bf16.mxu1 %v4770_v2  ;;  %v4771_v30 = vld [vmem:[%s6449_s13 + $0x10] ss:$8 sps:$4 sm:$0xff]   ;;  %v5051_v3 = vmov 0  }
 0x651   :  { %4029 = vmatpush1.bf16.msra.mxu1 %v4768_v45  ;;  %4060 = vmatprep.mubr.bf16.mxu1 %v5051_v3  ;;  %v3978_v45 = vsub.s32 1, %v5385_v42 }
 0x652   :  { %4699 = vmatprep.mubr.msk.bf16.mxu0 %vm122_vm0, %v3786_v60  ;;  %4030 = vmatprep.subr.bf16.mxu1 %v4773_v63  ;;  %v4776_v60 = vld [vmem:[%s6449_s13 + $0x24] ss:$8 sps:$4 sm:$0xff]  }
 0x655   :  { %4031 = vmatpush1.bf16.msra.mxu1 %v4771_v30 }
 0x656   :  { %4032 = vmatprep.subr.bf16.mxu1 %v4776_v60 }
 0x673   :  { %v4739_v26 = vpop.permute.xlu1 %4738 }
 0x674   :  { %v4741_v61 = vunpack.i.h.bf16 %v4739_v26  ;;  %v4740_v12 = vunpack.i.l.bf16 %v4739_v26  ;;  %v4774_v26 = vld [vmem:[%s6449_s13 + $0x20] ss:$8 sps:$4 sm:$0xff]  }
 0x675   :  { %4033 = vmatpush1.bf16.msra.mxu1 %v4774_v26 }
 0x676   :  { %v3775_v35 = vsel %vm2244_vm2, %v3720_v53, %v4741_v61  ;;  %v3774_v46 = vsel %vm2244_vm2, %v3652_v57, %v4740_v12  ;;  %v4777_v61 = vld [vmem:[%s6449_s13 + $0x30] ss:$8 sps:$4 sm:$0xff]  }
 0x677   :  { %v4744_v22 = vpop.permute.xlu1 %4743 }
 0x678   :  { %v4746_v18 = vunpack.i.h.bf16 %v4744_v22  ;;  %v4745_v54 = vunpack.i.l.bf16 %v4744_v22  ;;  %v4779_v22 = vld [vmem:[%s6449_s13 + $0x34] ss:$8 sps:$4 sm:$0xff]  }
 0x679   :  { %4034 = vmatprep.subr.bf16.mxu1 %v4779_v22 }
 0x67a   :  { %v3779_v40 = vsel %vm3776_vm5, %v3774_v46, %v4745_v54  ;;  %v3780_v14 = vsel %vm3776_vm5, %v3775_v35, %v4746_v18  ;;  %4035 = vmatpush1.bf16.msra.mxu1 %v4777_v61 }
 0x67b   :  { %v4749_v34 = vpop.permute.xlu1 %4748 }
 0x67c   :  { %v4751_v15 = vunpack.i.h.bf16 %v4749_v34  ;;  %v4750_v17 = vunpack.i.l.bf16 %v4749_v34 }
 0x67e   :  { %v3784_v56 = vsel %vm3781_vm6, %v3779_v40, %v4750_v17  ;;  %v3785_v25 = vsel %vm3781_vm6, %v3780_v14, %v4751_v15 }
 0x67f   :  { %v3787_v7 = vpack.c.bf16 %v3785_v25, %v3784_v56 }
 0x681   :  { %4700 = vmatmul.mubr.msk.bf16.vlgmr.msra.gmra.mrb[32].mxu0 %vm122_vm0, %v3787_v7 }
 0x754   :  { %v4701_v49 = vpop.f32.mrb[32].mxu0 }
 0x755   :  { %v3867_v39 = vpop.f32.mrb[33].mxu0  ;;  %v3876_v52 = vadd.f32 %v4701_v49, %v4439_v37 }
 0x756   :  { %v3868_v62 = vadd.f32 %v4439_v37, %v3867_v39  ;;  %v4702_v50 = vpop.f32.mrb[34].mxu0 }
 0x757   :  { %v3870_v33 = vpop.f32.mrb[35].mxu0  ;;  %v6258_v23 = vadd.f32 %v4893_v21, %v3876_v52  ;;  %v3879_v5 = vadd.f32 %v4702_v50, %v4439_v37 }
 0x758   :  { %v6253_v51 = vadd.f32 %v4892_v19, %v3868_v62  ;;  %v3871_v28 = vadd.f32 %v4439_v37, %v3870_v33  ;;  %v4446_v37 = vld [vmem:[%s6447_s11] ss:$0 sm:$0xff] }
 0x759   :  { %v6272_v43 = vadd.f32 %v4895_v0, %v3879_v5  ;;  %v3894_v4 = vsel %vm122_vm0, %v6258_v23, 0.0  ;;  %v4447_v33 = vld [vmem:[%s6448_s12] ss:$0 sm:$0xff] }
 0x75a   :  { %v6263_v10 = vadd.f32 %v4894_v1, %v3871_v28  ;;  %v3888_v57 = vsel %vm122_vm0, %v6253_v51, 0.0 }
 0x75b   :  { %3889 = vadd.xlane.f32.xlu0 %v3888_v57  ;;  %v3897_v31 = vsel %vm122_vm0, %v6272_v43, 0.0 }
 0x75c   :  { %v3891_v47 = vsel %vm122_vm0, %v6263_v10, 0.0 }
 0x75d   :  { %3892 = vadd.xlane.f32.xlu1 %v3891_v47 }
 0x75f   :  { %3895 = vadd.xlane.f32.xlu0 %v3894_v4 }
 0x763   :  { %3898 = vadd.xlane.f32.xlu0 %v3897_v31 }
 0x7e8   :  { %v3890_v20 = vpop.xlane.xlu0 %3889 }
 0x7e9   :  { %v3900_v6 = vmul.f32 0.015625, %v3890_v20 }
 0x7ea   :  { %v3893_v53 = vpop.xlane.xlu1 %3892 }
 0x7eb   :  { %v3904_v32 = vsub.f32 %v6253_v51, %v3900_v6  ;;  %v3901_v9 = vmul.f32 0.015625, %v3893_v53  ;;  %v4780_v53 = vld [vmem:[%s6451_s15 + $0x40] sm:$0xff]  }
 0x7ec   :  { %v3896_v36 = vpop.xlane.xlu0 %3895  ;;  %4531 = vmatprep.subr.bf16.mxu0 %v4780_v53 }
 0x7ed   :  { %v3905_v13 = vsub.f32 %v6263_v10, %v3901_v9  ;;  %v3902_v29 = vmul.f32 0.015625, %v3896_v36  ;;  %v3908_v58 = vmul.f32 %v3904_v32, %v3904_v32  ;;  %v4782_v9 = vld [vmem:[%s6451_s15 + $0x48] sm:$0xff]  }
 0x7ee   :  { %v4783_v36 = vld [vmem:[%s6451_s15 + $0x8] sm:$0xff]  }
 0x7ef   :  { %v3906_v41 = vsub.f32 %v6258_v23, %v3902_v29  ;;  %v3912_v59 = vsel %vm122_vm0, %v3908_v58, 0.0  ;;  %v3909_v24 = vmul.f32 %v3905_v13, %v3905_v13  ;;  %v4785_v29 = vld [vmem:[%s6451_s15 + $0x10] sm:$0xff]   ;;  %v4786_v58 = vld [vmem:[%s6451_s15 + $0x58] sm:$0xff]  }
 0x7f0   :  { %3913 = vadd.xlane.f32.xlu0 %v3912_v59  ;;  %v3899_v48 = vpop.xlane.xlu0 %3898  ;;  %v4788_v59 = vld [vmem:[%s6451_s15 + $0x60] sm:$0xff]  }
 0x7f1   :  { %v3903_v55 = vmul.f32 0.015625, %v3899_v48  ;;  %v3915_v44 = vsel %vm122_vm0, %v3909_v24, 0.0  ;;  %v3910_v27 = vmul.f32 %v3906_v41, %v3906_v41  ;;  %v4789_v24 = vld [vmem:[%s6451_s15 + $0x20] sm:$0xff]   ;;  %v4790_v48 = vld [vmem:[%s6451_s15 + $0x68] sm:$0xff]  }
 0x7f2   :  { %3916 = vadd.xlane.f32.xlu1 %v3915_v44  ;;  %v4792_v44 = vld [vmem:[%s6451_s15 + $0x70] sm:$0xff]  }
 0x7f3   :  { %v3907_v8 = vsub.f32 %v6272_v43, %v3903_v55  ;;  %v3918_v11 = vsel %vm122_vm0, %v3910_v27, 0.0  ;;  %v4791_v55 = vld [vmem:[%s6451_s15 + $0x28] sm:$0xff]   ;;  %v4793_v27 = vld [vmem:[%s6451_s15 + $0x30] sm:$0xff]  }
 0x7f4   :  { %3919 = vadd.xlane.f32.xlu0 %v3918_v11  ;;  %v4795_v11 = vld [vmem:[%s6451_s15 + $0x38] sm:$0xff]  }
 0x7f5   :  { %v3911_v16 = vmul.f32 %v3907_v8, %v3907_v8 }
 0x7f7   :  { %v3921_v38 = vsel %vm122_vm0, %v3911_v16, 0.0  ;;  %v3974_v16 = vsub.s32 0, %v5385_v42 }
 0x7f8   :  { %3922 = vadd.xlane.f32.xlu1 %v3921_v38  ;;  %v3970_v38 = vld [vmem:[%s6450_s14] sm:$0x3] }
 0x7f9   :  { %v3975_v2 = vrot.slane %v3970_v38, %v3974_v16  ;;  %v3979_v63 = vrot.slane %v3970_v38, %v3978_v45 }
 0x87d   :  { %v3914_v12 = vpop.xlane.xlu0 %3913 }
 0x87e   :  { %v3924_v18 = vmul.f32 0.015625, %v3914_v12 }
 0x87f   :  { %v3917_v54 = vpop.xlane.xlu1 %3916 }
 0x880   :  { %v3928_v34 = vadd.f32 1e-05, %v3924_v18  ;;  %v3925_v35 = vmul.f32 0.015625, %v3917_v54 }
 0x881   :  { %v3920_v46 = vpop.xlane.xlu0 %3919 }
 0x882   :  { %4868 = vrsqrt.f32 %v3928_v34  ;;  %v3929_v15 = vadd.f32 1e-05, %v3925_v35  ;;  %v3926_v17 = vmul.f32 0.015625, %v3920_v46 }
 0x884   :  { %4870 = vrsqrt.f32 %v3929_v15  ;;  %v3930_v40 = vadd.f32 1e-05, %v3926_v17 }
 0x885   :  { %v3923_v14 = vpop.xlane.xlu1 %3922 }
 0x886   :  { %4872 = vrsqrt.f32 %v3930_v40  ;;  %v3927_v56 = vmul.f32 0.015625, %v3923_v14 }
 0x888   :  { %v3931_v25 = vadd.f32 1e-05, %v3927_v56 }
 0x88a   :  { %4874 = vrsqrt.f32 %v3931_v25 }
 0x88c   :  { %v4869_v7 = vpop.eup %4868 }
 0x88d   :  { %v3936_v49 = vmul.f32 %v4869_v7, %v3904_v32  ;;  %v4781_v32 = vld [vmem:[%s6451_s15] sm:$0xff]  }
 0x88e   :  { %v4871_v39 = vpop.eup %4870  ;;  %4532 = vmatpush3.bf16.msra.mxu0 %v4781_v32 }
 0x88f   :  { %v3946_v52 = vmul.f32 %v4446_v37, %v3936_v49  ;;  %v3937_v62 = vmul.f32 %v4871_v39, %v3905_v13  ;;  %4533 = vmatprep.subr.bf16.mxu0 %v4782_v9  ;;  %v4784_v13 = vld [vmem:[%s6451_s15 + $0x50] sm:$0xff]  }
 0x890   :  { %v4873_v50 = vpop.eup %4872 }
 0x891   :  { %v3947_v19 = vmul.f32 %v4446_v37, %v3937_v62  ;;  %v3938_v28 = vmul.f32 %v4873_v50, %v3906_v41  ;;  %v3956_v21 = vadd.f32 %v4447_v33, %v3946_v52  ;;  %v4787_v41 = vld [vmem:[%s6451_s15 + $0x18] sm:$0xff]  }
 0x892   :  { %4534 = vmatpush3.bf16.msra.mxu0 %v4783_v36 }
 0x893   :  { %v3957_v5 = vadd.f32 %v4447_v33, %v3947_v19  ;;  %v3948_v0 = vmul.f32 %v4446_v37, %v3938_v28  ;;  %4535 = vmatprep.subr.bf16.mxu0 %v4784_v13 }
 0x894   :  { %v4875_v1 = vpop.eup %4874 }
 0x895   :  { %v3939_v57 = vmul.f32 %v4875_v1, %v3907_v8  ;;  %v3960_v47 = vpack.c.bf16 %v3957_v5, %v3956_v21  ;;  %v3958_v20 = vadd.f32 %v4447_v33, %v3948_v0  ;;  %v4794_v8 = vld [vmem:[%s6451_s15 + $0x78] sm:$0xff]  }
 0x896   :  { %4536 = vmatpush3.bf16.msra.mxu0 %v4785_v29 }
 0x897   :  { %4456 = vmatmul.mubr.msk.bf16.vlgmr.msra.gmra.mrb[44].mxu1 %vm122_vm0, %v3960_v47  ;;  %v3949_v4 = vmul.f32 %v4446_v37, %v3939_v57  ;;  %4537 = vmatprep.subr.bf16.mxu0 %v4786_v58 }
 0x898   :  { %4070 = vmatprep.mubr.bf16.mxu1 %v5051_v3 }
 0x899   :  { %v3959_v31 = vadd.f32 %v4447_v33, %v3949_v4 }
 0x89a   :  { %4538 = vmatpush3.bf16.msra.mxu0 %v4787_v41 }
 0x89b   :  { %v3961_v6 = vpack.c.bf16 %v3959_v31, %v3958_v20  ;;  %4539 = vmatprep.subr.bf16.mxu0 %v4788_v59 }
 0x89e   :  { %4540 = vmatpush3.bf16.msra.mxu0 %v4789_v24 }
 0x89f   :  { %4457 = vmatmul.mubr.msk.bf16.gmra.mrb[48].mxu1 %vm122_vm0, %v3961_v6  ;;  %4541 = vmatprep.subr.bf16.mxu0 %v4790_v48 }
 0x8a2   :  { %4542 = vmatpush3.bf16.msra.mxu0 %v4791_v55 }
 0x8a3   :  { %4543 = vmatprep.subr.bf16.mxu0 %v4792_v44 }
 0x8a6   :  { %4544 = vmatpush3.bf16.msra.mxu0 %v4793_v27 }
 0x8a7   :  { %4545 = vmatprep.subr.bf16.mxu0 %v4794_v8 }
 0x8aa   :  { %4546 = vmatpush3.bf16.msra.mxu0 %v4795_v11 }
 0x96a   :  { %v4062_v30 = vpop.f32.mrb[44].mxu1 }
 0x96b   :  { %v6371_v3 = vadd.f32 %v4062_v30, %v3975_v2  ;;  %v4064_v60 = vpop.f32.mrb[45].mxu1 }
 0x96c   :  { %v6373_v26 = vadd.f32 %v4064_v60, %v3979_v63  ;;  %v4066_v22 = vpop.f32.mrb[46].mxu1 }
 0x96d   :  { %v4089_v61 = vmul.f32 0.044715, %v6371_v3  ;;  %v6376_v12 = vadd.f32 %v4066_v22, %v3975_v2  ;;  %v4068_v18 = vpop.f32.mrb[47].mxu1  ;;  %v4081_v22 = vmul.f32 0.5, %v6371_v3 }
 0x96e   :  { %v4090_v54 = vmul.f32 0.044715, %v6373_v26  ;;  %v6379_v34 = vadd.f32 %v4068_v18, %v3979_v63 }
 0x96f   :  { %v4097_v42 = vmul.f32 %v4089_v61, %v6371_v3  ;;  %v4091_v35 = vmul.f32 0.044715, %v6376_v12  ;;  %v4083_v61 = vmul.f32 0.5, %v6376_v12 }
 0x970   :  { %v4098_v46 = vmul.f32 %v4090_v54, %v6373_v26  ;;  %v4092_v15 = vmul.f32 0.044715, %v6379_v34  ;;  %v4082_v54 = vmul.f32 0.5, %v6373_v26 }
 0x971   :  { %v4105_v17 = vmul.f32 %v4097_v42, %v6371_v3  ;;  %v4099_v40 = vmul.f32 %v4091_v35, %v6376_v12  ;;  %v4084_v42 = vmul.f32 0.5, %v6379_v34 }
 0x972   :  { %v4106_v14 = vmul.f32 %v4098_v46, %v6373_v26  ;;  %v4100_v56 = vmul.f32 %v4092_v15, %v6379_v34  ;;  %v4072_v25 = vpop.f32.mrb[48].mxu1 }
 0x973   :  { %v4113_v7 = vadd.f32 %v4105_v17, %v6371_v3  ;;  %v4107_v37 = vmul.f32 %v4099_v40, %v6376_v12  ;;  %v6391_v49 = vadd.f32 %v4072_v25, %v3975_v2  ;;  %v4074_v39 = vpop.f32.mrb[49].mxu1 }
 0x974   :  { %v4108_v52 = vmul.f32 %v4100_v56, %v6379_v34  ;;  %v6394_v62 = vadd.f32 %v4074_v39, %v3979_v63  ;;  %v4076_v50 = vpop.f32.mrb[50].mxu1  ;;  %v4114_v33 = vadd.f32 %v4106_v14, %v6373_v26 }
 0x975   :  { %v4121_v19 = vmul.f32 0.7978846, %v4113_v7  ;;  %v4115_v28 = vadd.f32 %v4107_v37, %v6376_v12  ;;  %v4093_v21 = vmul.f32 0.044715, %v6391_v49  ;;  %v4077_v5 = vadd.f32 %v4076_v50, %v3975_v2  ;;  %v4078_v1 = vpop.f32.mrb[51].mxu1 }
 0x976   :  { %v4094_v57 = vmul.f32 0.044715, %v6394_v62  ;;  %v4079_v47 = vadd.f32 %v4078_v1, %v3979_v63  ;;  %v4116_v0 = vadd.f32 %v4108_v52, %v6379_v34  ;;  %v4122_v4 = vmul.f32 0.7978846, %v4114_v33 }
 0x977   :  { %4876 = vtanh.f32 %v4121_v19  ;;  %v4123_v31 = vmul.f32 0.7978846, %v4115_v28  ;;  %v4101_v20 = vmul.f32 %v4093_v21, %v6391_v49  ;;  %v4095_v6 = vmul.f32 0.044715, %v4077_v5 }
 0x978   :  { %v4102_v53 = vmul.f32 %v4094_v57, %v6394_v62  ;;  %v4096_v32 = vmul.f32 0.044715, %v4079_v47  ;;  %v4124_v9 = vmul.f32 0.7978846, %v4116_v0  ;;  %4878 = vtanh.f32 %v4122_v4 }
 0x979   :  { %4880 = vtanh.f32 %v4123_v31  ;;  %v4109_v36 = vmul.f32 %v4101_v20, %v6391_v49  ;;  %v4103_v13 = vmul.f32 %v4095_v6, %v4077_v5  ;;  %v4085_v12 = vmul.f32 0.5, %v6391_v49  ;;  %v4458_v20 = vld [vmem:[%s6452_s16] ss:$0 sm:$0xff]  ;;  %s5052_s16 = smov [#allocation11]  }
 0x97a   :  { %v4110_v29 = vmul.f32 %v4102_v53, %v6394_v62  ;;  %v4104_v58 = vmul.f32 %v4096_v32, %v4079_v47  ;;  %4882 = vtanh.f32 %v4124_v9  ;;  %v4087_v26 = vmul.f32 0.5, %v4077_v5  ;;  %s4354_s18 = sshll.u32 %s5052_s16, 4  ;;  %s4355_s18 = int_to_ptr.vmem [resolvable:$true] %s4354_s18 }
 0x97b   :  { %v4111_v41 = vmul.f32 %v4103_v13, %v4077_v5  ;;  %v4117_v59 = vadd.f32 %v4109_v36, %v6391_v49  ;;  %v4086_v34 = vmul.f32 0.5, %v6394_v62  ;;  %v4088_v33 = vmul.f32 0.5, %v4079_v47  ;;  %s5006_s5 = scalar_lea.vmem %s4355_s18, 512  ;;  %p5011_p13 = scmp.lt.s32.totalorder %s4355_s18, %s4355_s18 }
 0x97c   :  { %v4112_v24 = vmul.f32 %v4104_v58, %v4079_v47  ;;  %v4118_v48 = vadd.f32 %v4110_v29, %v6394_v62  ;;  %p5007_p12 = scmp.ne.s32.totalorder %s4355_s18, %s5006_s5  ;;  %p5012_p0 = scmp.lt.s32.totalorder %s5006_s5, %s5006_s5 }
 0x97d   :  { %v4119_v55 = vadd.f32 %v4111_v41, %v4077_v5  ;;  %v4125_v44 = vmul.f32 0.7978846, %v4117_v59 }
 0x97e   :  { %v4120_v27 = vadd.f32 %v4112_v24, %v4079_v47  ;;  %v4126_v8 = vmul.f32 0.7978846, %v4118_v48  ;;  %p5013_p1 = por %p5012_p0, %p5011_p13 }
 0x97f   :  { %v4127_v11 = vmul.f32 0.7978846, %v4119_v55  ;;  %4884 = vtanh.f32 %v4125_v44 }
 0x980   :  { %v4128_v16 = vmul.f32 0.7978846, %v4120_v27  ;;  %4886 = vtanh.f32 %v4126_v8  ;;  %p5014_p2 = pnand %p5013_p1, %p5007_p12 }
 0x981   :  { %v4877_v38 = vpop.eup %4876  ;;  %4888 = vtanh.f32 %v4127_v11 }
 0x982   :  { %v4879_v45 = vpop.eup %4878  ;;  %v4137_v2 = vadd.f32 1.0, %v4877_v38  ;;  %4890 = vtanh.f32 %v4128_v16 }
 0x983   :  { %v4881_v63 = vpop.eup %4880  ;;  %v4138_v30 = vadd.f32 1.0, %v4879_v45 }
 0x984   :  { %v4883_v60 = vpop.eup %4882  ;;  %v4139_v18 = vadd.f32 1.0, %v4881_v63  ;;  %v4145_v46 = vmul.f32 %v4137_v2, %v4081_v22 }
 0x985   :  { %v4140_v35 = vadd.f32 1.0, %v4883_v60  ;;  %v4146_v17 = vmul.f32 %v4138_v30, %v4082_v54 }
 0x986   :  { %v4147_v15 = vmul.f32 %v4139_v18, %v4083_v61 }
 0x987   :  { %v4148_v40 = vmul.f32 %v4140_v35, %v4084_v42 }
 0x988   :  { %v4153_v14 = vpack.c.bf16 %v4147_v15, %v4145_v46 }
 0x989   :  { %v4885_v56 = vpop.eup %4884  ;;  %v4154_v25 = vpack.c.bf16 %v4148_v40, %v4146_v17 }
 0x98a   :  { %v4887_v7 = vpop.eup %4886  ;;  %v4141_v37 = vadd.f32 1.0, %v4885_v56 }
 0x98b   :  { %v4889_v39 = vpop.eup %4888  ;;  %4324 = vmatprep.mubr.bf16.mxu0 %v4154_v25  ;;  %v4142_v3 = vadd.f32 1.0, %v4887_v7 }
 0x98c   :  { %v4891_v52 = vpop.eup %4890  ;;  %4325 = vmatmul.mubr.bf16.vlgmr.msra.gmra.mrb[36].mxu0 %v4153_v14  ;;  %v4143_v50 = vadd.f32 1.0, %v4889_v39  ;;  %v4149_v28 = vmul.f32 %v4141_v37, %v4085_v12 }
 0x98d   :  { %v4144_v19 = vadd.f32 1.0, %v4891_v52  ;;  %v4150_v1 = vmul.f32 %v4142_v3, %v4086_v34 }
 0x98e   :  { %v4151_v21 = vmul.f32 %v4143_v50, %v4087_v26 }
 0x98f   :  { %v4152_v57 = vmul.f32 %v4144_v19, %v4088_v33 }
 0x990   :  { %v4155_v0 = vpack.c.bf16 %v4151_v21, %v4149_v28 }
 0x991   :  { %v4156_v4 = vpack.c.bf16 %v4152_v57, %v4150_v1 }
 0x993   :  { %4332 = vmatprep.mubr.bf16.mxu0 %v4156_v4 }
 0x994   :  { %4333 = vmatmul.mubr.bf16.gmra.mrb[40].mxu0 %v4155_v0 }
 0xa5f   :  { %v4547_v31 = vpop.f32.mrb[36].mxu0 }
 0xa60   :  { %v4548_v49 = vpop.f32.mrb[37].mxu0 }
 0xa61   :  { %v4549_v5 = vadd.f32 %v4548_v49, %v4547_v31  ;;  %v4550_v6 = vpop.f32.mrb[38].mxu0 }
 0xa62   :  { %v4551_v53 = vpop.f32.mrb[39].mxu0 }
 0xa63   :  { %v4327_v62 = vadd.f32 %v4549_v5, %v4458_v20  ;;  %v4552_v47 = vadd.f32 %v4551_v53, %v4550_v6 }
 0xa65   :  { %v4341_v32 = vadd.f32 %v4327_v62, %v6253_v51  ;;  %v4330_v9 = vadd.f32 %v4552_v47, %v4458_v20 }
 0xa67   :  { %4345 = vst.msk [vmem:[#allocation11] sm:$0xff] %vm122_vm0, %v4341_v32  ;;  %v4342_v36 = vadd.f32 %v4330_v9, %v6263_v10  ;;  %v4553_v13 = vpop.f32.mrb[40].mxu0 }
 0xa68   :  { %v4554_v29 = vpop.f32.mrb[41].mxu0 }
 0xa69   :  { %4346 = vst.msk [vmem:[#allocation11 + $0x8] sm:$0xff] %vm122_vm0, %v4342_v36  ;;  %v4555_v58 = vadd.f32 %v4554_v29, %v4553_v13  ;;  %v4556_v41 = vpop.f32.mrb[42].mxu0 }
 0xa6a   :  { %v4557_v59 = vpop.f32.mrb[43].mxu0 }
 0xa6b   :  { %v4335_v24 = vadd.f32 %v4555_v58, %v4458_v20  ;;  %v4558_v48 = vadd.f32 %v4557_v59, %v4556_v41 }
 0xa6d   :  { %v4343_v55 = vadd.f32 %v4335_v24, %v6258_v23  ;;  %v4338_v44 = vadd.f32 %v4558_v48, %v4458_v20 }
 0xa6f   :  { %4347 = vst.msk [vmem:[#allocation11 + $0x10] sm:$0xff] %vm122_vm0, %v4343_v55  ;;  %v4344_v51 = vadd.f32 %v4338_v44, %v6272_v43 }
 0xa71   :  { %4348 = vst.msk [vmem:[#allocation11 + $0x18] sm:$0xff] %vm122_vm0, %v4344_v51 }
 0xa72   :  { %5017 = shalt.err (!%p5014_p2)
}
 0xa73   :  { %s5018_s4 = scalar_lea.hbm %s6453_s17, 512 }
 0xa74   :  { %p5019_p3 = scmp.ne.s32.totalorder %s6453_s17, %s5018_s4  ;;  %p5022_p4 = scmp.lt.u32.totalorder %s5018_s4, %s6453_s17 }
 0xa76   :  { %p5024_p5 = pnand %p5022_p4, %p5019_p3 }
 0xa78   :  { %5027 = shalt.err (!%p5024_p5)
}
 0xa79   :  { %s5053_s21 = smov 128   ;;  %s5054_s28 = smov 8  }
 0xa7a   :  { %4360 = dma.vmem_to_hbm [thread:$0]  %s4355_s18, 512, %s6453_s17, [#allocation4], %s5053_s21, %s5053_s21, %s5054_s28  }
 0xa7b   :  { %5034 = dma.done.wait [#allocation4], 512  }
 0xa7c   :  { %5035 = vsyncadd [#allocation4], 4294966784 }
 0xa7d   :  { %4364 = vsyncpa [#allocation3], 1 }
 0xa7e   :  { %4365 = vsyncpa [#allocation6], 1 }
 0xa7f   :  { %4366 = vsyncpa [#allocation9], 1 }
 0xa80   :  { %4367 = vsyncpa [#allocation4], 1 }

</bundles_post_ra>
